<compile_context>
chip_gen: v6e
topology: v6e:2x2x1
jax: 0.10.0
libtpu: 0.0.40
codegen_flags: <defaults>
</compile_context>

<pallas_src>
import functools

import jax
import jax.numpy as jnp
from jax import lax
from jax.experimental import pallas as pl
from jax.experimental.pallas import tpu as pltpu

_LANES = 128
_PI = 3.141592653589793
_HALF_PI = 1.5707963267948966

# Abramowitz & Stegun 4.4.49 minimax polynomial for atan(z), z in [0, 1],
# |error| <= 2e-8 (well below f32 resolution of the result).
_ATAN_COEFFS = (
    -0.3333314528, 0.1999355085, -0.1420889944, 0.1065626393,
    -0.0752896400, 0.0429096138, -0.0161657367, 0.0028662257,
)


def _atan_unit(z):
    """atan(z) for z in [0, 1]."""
    z2 = z * z
    p = jnp.float32(_ATAN_COEFFS[-1])
    for c in reversed(_ATAN_COEFFS[:-1]):
        p = p * z2 + jnp.float32(c)
    return z + z * z2 * p


def _atan2_nonneg_y(y, x):
    """atan2(y, x) for y >= 0, result in [0, pi]; matches torch.atan2 on this domain."""
    ax = jnp.abs(x)
    big = jnp.maximum(y, ax)
    small = jnp.minimum(y, ax)
    z = small / jnp.maximum(big, 1e-30)           # z in [0, 1]
    th = _atan_unit(z)
    th = jnp.where(y > ax, jnp.float32(_HALF_PI) - th, th)
    th = jnp.where(x < 0.0, jnp.float32(_PI) - th, th)
    return th


def _block_partial(tile_sum, tile_r):
    """(tile_r, 128) -> (8, 128): fold sublane-tile groups with plain VALU adds."""
    part = tile_sum[0:8]
    for rr in range(8, tile_r, 8):
        part = part + tile_sum[rr:rr + 8]
    return part


def _angle_loss_kernel(x_ref, out_ref, *, chains, limits, loss_kind,
                       n_valid, tile_r, has_pad):
    """Per-block sum of per-(sample, chain) angle-limit penalties -> (8,128) partial."""
    i = pl.program_id(0)

    # Load / upcast each coordinate row at most once per block (Mosaic does not
    # reliably CSE ref loads).
    coords = {}

    def coord(r):
        if r not in coords:
            coords[r] = x_ref[r].astype(jnp.float32)
        return coords[r]

    tile_sum = jnp.zeros((tile_r, _LANES), jnp.float32)
    for (p, j, c), (lo_a, hi_a) in zip(chains, limits):
        jx, jy, jz = coord(3 * j), coord(3 * j + 1), coord(3 * j + 2)
        v1x = coord(3 * p) - jx
        v1y = coord(3 * p + 1) - jy
        v1z = coord(3 * p + 2) - jz
        v2x = coord(3 * c) - jx
        v2y = coord(3 * c + 1) - jy
        v2z = coord(3 * c + 2) - jz
        # atan2(||v1 x v2||, v1 . v2) is scale-invariant, so normalization is skipped.
        cx = v1y * v2z - v1z * v2y
        cy = v1z * v2x - v1x * v2z
        cz = v1x * v2y - v1y * v2x
        cross_n = jnp.sqrt(cx * cx + cy * cy + cz * cz)
        dot = v1x * v2x + v1y * v2y + v1z * v2z
        angle = _atan2_nonneg_y(cross_n, dot)
        # angle-limit violation (same where-ordering as the reference module)
        err = jnp.where(angle < lo_a, lo_a - angle, 0.0)
        err = jnp.where(angle > hi_a, angle - hi_a, err)
        # err >= 0 by construction -> no abs() needed.
        if loss_kind == "l1":
            val = err
        elif loss_kind == "mse":
            val = err * err
        else:  # huber == smooth_l1, beta = 1.0
            val = jnp.where(err < 1.0, 0.5 * err * err, err - 0.5)
        tile_sum = tile_sum + val

    if has_pad:
        last = pl.num_programs(0) - 1

        @pl.when(i == last)
        def _masked():
            # Only the last block contains zero-padded lanes; mask once per block.
            row_ids = lax.broadcasted_iota(jnp.int32, (tile_r, _LANES), 0)
            lane_ids = lax.broadcasted_iota(jnp.int32, (tile_r, _LANES), 1)
            gidx = (i * tile_r + row_ids) * _LANES + lane_ids
            masked = jnp.where(gidx < n_valid, tile_sum, 0.0)
            out_ref[0] = _block_partial(masked, tile_r)

        @pl.when(i != last)
        def _unmasked():
            out_ref[0] = _block_partial(tile_sum, tile_r)
    else:
        out_ref[0] = _block_partial(tile_sum, tile_r)


def _round_up(x, m):
    return ((x + m - 1) // m) * m


@functools.partial(jax.jit,
                   static_argnames=("used", "chains", "limits", "loss_kind"))
def _angle_loss_sum(poses_flat, *, used, chains, limits, loss_kind):
    n = poses_flat.shape[0]
    u3 = 3 * len(used)
    itemsize = poses_flat.dtype.itemsize
    gran = {4: 8, 2: 16, 1: 32}.get(itemsize, 8)  # sublane tiling granularity

    # Gather only the joints the chains reference; put samples on the 128-lane axis.
    # TODO(synk): audit this host-side relayout for very large N (it is ~2x the
    #             kernel's own HBM read); allow_input_fusion could fold it in.
    gathered = jnp.take(poses_flat, jnp.asarray(used, jnp.int32), axis=1)  # (N, U, 3)
    xt = gathered.reshape(n, u3).T                                         # (3U, N)

    rows_needed = max(1, -(-n // _LANES))
    # tile_r budget: double-buffered input block + f32 coordinate cache must fit
    # comfortably under the explicit 32 MiB scoped-VMEM limit (headroom left for
    # compiler temporaries).  Cap at 512 rows per the per-generation sizing.
    budget = 20 * 1024 * 1024
    per_row = u3 * _LANES * (2 * itemsize + 4)
    tile_r = min(512, max(gran, (budget // per_row) // gran * gran))
    tile_r = min(tile_r, _round_up(rows_needed, gran))
    rows = _round_up(rows_needed, tile_r)          # pad rows to a multiple of tile_r
    grid_n = rows // tile_r
    has_pad = (rows * _LANES) != n

    slab = jnp.pad(xt, ((0, 0), (0, rows * _LANES - n)))  # zero tail pad only
    slab = slab.reshape(u3, rows, _LANES)

    kernel = functools.partial(
        _angle_loss_kernel, chains=chains, limits=limits, loss_kind=loss_kind,
        n_valid=n, tile_r=tile_r, has_pad=has_pad)

    # TODO(synk): consider pipeline_mode=pl.Buffered(3) on the input spec if xprof
    #             shows exposed DMA once compute no longer covers the transfer.
    partials = pl.pallas_call(
        kernel,
        out_shape=jax.ShapeDtypeStruct((grid_n, 8, _LANES), jnp.float32),
        grid_spec=pltpu.PrefetchScalarGridSpec(
            num_scalar_prefetch=0,
            grid=(grid_n,),
            in_specs=[pl.BlockSpec((u3, tile_r, _LANES), lambda i: (0, i, 0))],
            out_specs=pl.BlockSpec((1, 8, _LANES), lambda i: (i, 0, 0)),
        ),
        compiler_params=pltpu.CompilerParams(
            dimension_semantics=("parallel",),
            vmem_limit_bytes=32 * 1024 * 1024),
    )(slab)
    return jnp.sum(partials)


class JointAngleLossPallas:
    """JAX/Pallas equivalent of JointAngleLoss.forward."""

    def __init__(self, joint_chains, angle_limits=None, loss_type="l1",
                 reduction="mean"):
        self.joint_chains = tuple(tuple(int(v) for v in ch) for ch in joint_chains)
        if angle_limits is None:
            angle_limits = [(0.0, 3.14159)] * len(self.joint_chains)
        assert len(self.joint_chains) == len(angle_limits), \
            "Number of joint chains must match number of angle limits"
        self.angle_limits = tuple((float(a), float(b)) for a, b in angle_limits)
        self.loss_type = loss_type.lower()
        if self.loss_type not in ("l1", "mse", "huber"):
            raise ValueError(f"Unsupported loss type: {loss_type}")
        self.reduction = reduction

        # Unique joints actually used -> gather only those; remap chain indices.
        used = tuple(sorted({j for ch in self.joint_chains for j in ch}))
        remap = {j: k for k, j in enumerate(used)}
        self._used = used
        self._chains_r = tuple((remap[p], remap[j], remap[c])
                               for p, j, c in self.joint_chains)

    def __call__(self, poses):
        if self.reduction == "none":
            # TODO(synk): reduction='none' needs a full per-element output slab; only
            # 'mean' / 'sum' are implemented in the kernel path.
            raise NotImplementedError("reduction='none' is not implemented")
        if poses.ndim == 4:
            b, t, j, _ = poses.shape
            poses_flat = poses.reshape(b * t, j, 3)
        else:
            poses_flat = poses
        n = poses_flat.shape[0]
        total = _angle_loss_sum(poses_flat, used=self._used,
                                chains=self._chains_r,
                                limits=self.angle_limits,
                                loss_kind=self.loss_type)
        if self.reduction == "mean":
            return total / jnp.float32(n * len(self.joint_chains))
        return total


def _reference_loss(poses, chains, limits, loss_type, reduction):
    """Plain-JAX mirror of the PyTorch module (for the self-check)."""
    pf = poses.reshape(-1, poses.shape[-2], 3).astype(jnp.float32)
    angles = []
    for (p, j, c) in chains:
        v1 = pf[:, p, :] - pf[:, j, :]
        v2 = pf[:, c, :] - pf[:, j, :]
        v1n = v1 / jnp.maximum(jnp.linalg.norm(v1, axis=-1, keepdims=True), 1e-12)
        v2n = v2 / jnp.maximum(jnp.linalg.norm(v2, axis=-1, keepdims=True), 1e-12)
        cr = jnp.cross(v1n, v2n)
        cn = jnp.linalg.norm(cr, axis=-1)
        dt = jnp.sum(v1n * v2n, axis=-1)
        angles.append(jnp.arctan2(cn, dt))
    angles = jnp.stack(angles, axis=-1)
    lo = jnp.asarray([l[0] for l in limits], jnp.float32)
    hi = jnp.asarray([l[1] for l in limits], jnp.float32)
    err = jnp.where(angles < lo, lo - angles, 0.0)
    err = jnp.where(angles > hi, angles - hi, err)
    if loss_type == "l1":
        vals = jnp.abs(err)
    elif loss_type == "mse":
        vals = err * err
    else:
        ae = jnp.abs(err)
        vals = jnp.where(ae < 1.0, 0.5 * err * err, ae - 0.5)
    return jnp.mean(vals) if reduction == "mean" else jnp.sum(vals)


if __name__ == "__main__":
    key = jax.random.PRNGKey(0)
    # sequence of poses: (batch=2, seq_len=8, num_joints=17, 3)
    poses = jax.random.normal(key, (2, 8, 17, 3), dtype=jnp.float32)

    # (parent, joint, child) triplets on a 17-joint skeleton + angle limits (radians)
    chains = [(5, 7, 9), (6, 8, 10), (11, 13, 15), (12, 14, 16),
              (7, 5, 11), (8, 6, 12)]
    limits = [(0.3, 2.9)] * 4 + [(0.2, 3.0)] * 2

    loss_mod = JointAngleLossPallas(chains, limits, loss_type="l1",
                                    reduction="mean")

    # sequence input (B, T, J, 3)
    out_seq = jax.block_until_ready(loss_mod(poses))
    ref_seq = _reference_loss(poses, chains, limits, "l1", "mean")
    assert jnp.allclose(out_seq, ref_seq, rtol=1e-5, atol=1e-5), (out_seq, ref_seq)

    # non-sequence input (B, J, 3) — reuses the same compiled kernel
    poses_3d = poses.reshape(16, 17, 3)
    out_3d = jax.block_until_ready(loss_mod(poses_3d))
    ref_3d = _reference_loss(poses_3d, chains, limits, "l1", "mean")
    assert jnp.allclose(out_3d, ref_3d, rtol=1e-5, atol=1e-5), (out_3d, ref_3d)

    print("KERNEL_OK")
</pallas_src>

<mosaic_0001>
module attributes {stable_mosaic.version = 11 : i64} {
  func.func @_angle_loss_kernel(%arg0: i32, %arg1: memref<36x8x128xf32, #tpu.memory_space<vmem>>, %arg2: memref<1x8x128xf32, #tpu.memory_space<vmem>>) attributes {dimension_semantics = [#tpu.dimension_semantics<parallel>], iteration_bounds = array<i64: 1>, scalar_prefetch = 0 : i64, scratch_operands = 0 : i64, tpu.core_type = #tpu.core_type<tc>, window_params = [{transform_indices = @transform_0, window_bounds = array<i64: 36, 8, 128>}, {transform_indices = @transform_1, window_bounds = array<i64: 1, 8, 128>}]} {
    %cst = arith.constant 0.000000e+00 : f32
    %0 = vector.broadcast %cst : f32 to vector<8x128xf32>
    %c6 = arith.constant 6 : index
    %c0 = arith.constant 0 : index
    %c0_0 = arith.constant 0 : index
    %1 = vector.load %arg1[%c6, %c0, %c0_0] : memref<36x8x128xf32, #tpu.memory_space<vmem>>, vector<1x8x128xf32>
    %2 = vector.shape_cast %1 : vector<1x8x128xf32> to vector<8x128xf32>
    %c7 = arith.constant 7 : index
    %c0_1 = arith.constant 0 : index
    %c0_2 = arith.constant 0 : index
    %3 = vector.load %arg1[%c7, %c0_1, %c0_2] : memref<36x8x128xf32, #tpu.memory_space<vmem>>, vector<1x8x128xf32>
    %4 = vector.shape_cast %3 : vector<1x8x128xf32> to vector<8x128xf32>
    %c8 = arith.constant 8 : index
    %c0_3 = arith.constant 0 : index
    %c0_4 = arith.constant 0 : index
    %5 = vector.load %arg1[%c8, %c0_3, %c0_4] : memref<36x8x128xf32, #tpu.memory_space<vmem>>, vector<1x8x128xf32>
    %6 = vector.shape_cast %5 : vector<1x8x128xf32> to vector<8x128xf32>
    %c0_5 = arith.constant 0 : index
    %c0_6 = arith.constant 0 : index
    %c0_7 = arith.constant 0 : index
    %7 = vector.load %arg1[%c0_5, %c0_6, %c0_7] : memref<36x8x128xf32, #tpu.memory_space<vmem>>, vector<1x8x128xf32>
    %8 = vector.shape_cast %7 : vector<1x8x128xf32> to vector<8x128xf32>
    %9 = arith.subf %8, %2 : vector<8x128xf32>
    %c1 = arith.constant 1 : index
    %c0_8 = arith.constant 0 : index
    %c0_9 = arith.constant 0 : index
    %10 = vector.load %arg1[%c1, %c0_8, %c0_9] : memref<36x8x128xf32, #tpu.memory_space<vmem>>, vector<1x8x128xf32>
    %11 = vector.shape_cast %10 : vector<1x8x128xf32> to vector<8x128xf32>
    %12 = arith.subf %11, %4 : vector<8x128xf32>
    %c2 = arith.constant 2 : index
    %c0_10 = arith.constant 0 : index
    %c0_11 = arith.constant 0 : index
    %13 = vector.load %arg1[%c2, %c0_10, %c0_11] : memref<36x8x128xf32, #tpu.memory_space<vmem>>, vector<1x8x128xf32>
    %14 = vector.shape_cast %13 : vector<1x8x128xf32> to vector<8x128xf32>
    %15 = arith.subf %14, %6 : vector<8x128xf32>
    %c12 = arith.constant 12 : index
    %c0_12 = arith.constant 0 : index
    %c0_13 = arith.constant 0 : index
    %16 = vector.load %arg1[%c12, %c0_12, %c0_13] : memref<36x8x128xf32, #tpu.memory_space<vmem>>, vector<1x8x128xf32>
    %17 = vector.shape_cast %16 : vector<1x8x128xf32> to vector<8x128xf32>
    %18 = arith.subf %17, %2 : vector<8x128xf32>
    %c13 = arith.constant 13 : index
    %c0_14 = arith.constant 0 : index
    %c0_15 = arith.constant 0 : index
    %19 = vector.load %arg1[%c13, %c0_14, %c0_15] : memref<36x8x128xf32, #tpu.memory_space<vmem>>, vector<1x8x128xf32>
    %20 = vector.shape_cast %19 : vector<1x8x128xf32> to vector<8x128xf32>
    %21 = arith.subf %20, %4 : vector<8x128xf32>
    %c14 = arith.constant 14 : index
    %c0_16 = arith.constant 0 : index
    %c0_17 = arith.constant 0 : index
    %22 = vector.load %arg1[%c14, %c0_16, %c0_17] : memref<36x8x128xf32, #tpu.memory_space<vmem>>, vector<1x8x128xf32>
    %23 = vector.shape_cast %22 : vector<1x8x128xf32> to vector<8x128xf32>
    %24 = arith.subf %23, %6 : vector<8x128xf32>
    %25 = arith.mulf %12, %24 : vector<8x128xf32>
    %26 = arith.mulf %15, %21 : vector<8x128xf32>
    %27 = arith.subf %25, %26 : vector<8x128xf32>
    %28 = arith.mulf %15, %18 : vector<8x128xf32>
    %29 = arith.mulf %9, %24 : vector<8x128xf32>
    %30 = arith.subf %28, %29 : vector<8x128xf32>
    %31 = arith.mulf %9, %21 : vector<8x128xf32>
    %32 = arith.mulf %12, %18 : vector<8x128xf32>
    %33 = arith.subf %31, %32 : vector<8x128xf32>
    %34 = arith.mulf %27, %27 : vector<8x128xf32>
    %35 = arith.mulf %30, %30 : vector<8x128xf32>
    %36 = arith.addf %34, %35 : vector<8x128xf32>
    %37 = arith.mulf %33, %33 : vector<8x128xf32>
    %38 = arith.addf %36, %37 : vector<8x128xf32>
    %39 = math.sqrt %38 : vector<8x128xf32>
    %40 = arith.mulf %9, %18 : vector<8x128xf32>
    %41 = arith.mulf %12, %21 : vector<8x128xf32>
    %42 = arith.addf %40, %41 : vector<8x128xf32>
    %43 = arith.mulf %15, %24 : vector<8x128xf32>
    %44 = arith.addf %42, %43 : vector<8x128xf32>
    %45 = math.absf %44 : vector<8x128xf32>
    %46 = arith.maximumf %39, %45 : vector<8x128xf32>
    %47 = arith.minimumf %39, %45 : vector<8x128xf32>
    %cst_18 = arith.constant 1.000000e-30 : f32
    %48 = vector.broadcast %cst_18 : f32 to vector<8x128xf32>
    %49 = arith.maximumf %46, %48 : vector<8x128xf32>
    %50 = arith.divf %47, %49 : vector<8x128xf32>
    %51 = arith.mulf %50, %50 : vector<8x128xf32>
    %cst_19 = arith.constant 0.00286622578 : f32
    %52 = vector.broadcast %cst_19 : f32 to vector<8x128xf32>
    %53 = arith.mulf %52, %51 : vector<8x128xf32>
    %cst_20 = arith.constant -0.0161657371 : f32
    %54 = vector.broadcast %cst_20 : f32 to vector<8x128xf32>
    %55 = arith.addf %53, %54 : vector<8x128xf32>
    %56 = arith.mulf %55, %51 : vector<8x128xf32>
    %cst_21 = arith.constant 0.0429096147 : f32
    %57 = vector.broadcast %cst_21 : f32 to vector<8x128xf32>
    %58 = arith.addf %56, %57 : vector<8x128xf32>
    %59 = arith.mulf %58, %51 : vector<8x128xf32>
    %cst_22 = arith.constant -0.0752896368 : f32
    %60 = vector.broadcast %cst_22 : f32 to vector<8x128xf32>
    %61 = arith.addf %59, %60 : vector<8x128xf32>
    %62 = arith.mulf %61, %51 : vector<8x128xf32>
    %cst_23 = arith.constant 0.106562637 : f32
    %63 = vector.broadcast %cst_23 : f32 to vector<8x128xf32>
    %64 = arith.addf %62, %63 : vector<8x128xf32>
    %65 = arith.mulf %64, %51 : vector<8x128xf32>
    %cst_24 = arith.constant -1.420890e-01 : f32
    %66 = vector.broadcast %cst_24 : f32 to vector<8x128xf32>
    %67 = arith.addf %65, %66 : vector<8x128xf32>
    %68 = arith.mulf %67, %51 : vector<8x128xf32>
    %cst_25 = arith.constant 0.199935511 : f32
    %69 = vector.broadcast %cst_25 : f32 to vector<8x128xf32>
    %70 = arith.addf %68, %69 : vector<8x128xf32>
    %71 = arith.mulf %70, %51 : vector<8x128xf32>
    %cst_26 = arith.constant -0.333331466 : f32
    %72 = vector.broadcast %cst_26 : f32 to vector<8x128xf32>
    %73 = arith.addf %71, %72 : vector<8x128xf32>
    %74 = arith.mulf %50, %51 : vector<8x128xf32>
    %75 = arith.mulf %74, %73 : vector<8x128xf32>
    %76 = arith.addf %50, %75 : vector<8x128xf32>
    %77 = arith.cmpf ogt, %39, %45 : vector<8x128xf32>
    %cst_27 = arith.constant 1.57079637 : f32
    %78 = vector.broadcast %cst_27 : f32 to vector<8x128xf32>
    %79 = arith.subf %78, %76 : vector<8x128xf32>
    %80 = arith.select %77, %79, %76 : vector<8x128xi1>, vector<8x128xf32>
    %cst_28 = arith.constant 0.000000e+00 : f32
    %81 = vector.broadcast %cst_28 : f32 to vector<8x128xf32>
    %82 = arith.cmpf olt, %44, %81 : vector<8x128xf32>
    %cst_29 = arith.constant 3.14159274 : f32
    %83 = vector.broadcast %cst_29 : f32 to vector<8x128xf32>
    %84 = arith.subf %83, %80 : vector<8x128xf32>
    %85 = arith.select %82, %84, %80 : vector<8x128xi1>, vector<8x128xf32>
    %cst_30 = arith.constant 3.000000e-01 : f32
    %86 = vector.broadcast %cst_30 : f32 to vector<8x128xf32>
    %87 = arith.cmpf olt, %85, %86 : vector<8x128xf32>
    %cst_31 = arith.constant 3.000000e-01 : f32
    %88 = vector.broadcast %cst_31 : f32 to vector<8x128xf32>
    %89 = arith.subf %88, %85 : vector<8x128xf32>
    %cst_32 = arith.constant 0.000000e+00 : f32
    %90 = vector.broadcast %cst_32 : f32 to vector<8x128xf32>
    %91 = arith.select %87, %89, %90 : vector<8x128xi1>, vector<8x128xf32>
    %cst_33 = arith.constant 2.900000e+00 : f32
    %92 = vector.broadcast %cst_33 : f32 to vector<8x128xf32>
    %93 = arith.cmpf ogt, %85, %92 : vector<8x128xf32>
    %cst_34 = arith.constant 2.900000e+00 : f32
    %94 = vector.broadcast %cst_34 : f32 to vector<8x128xf32>
    %95 = arith.subf %85, %94 : vector<8x128xf32>
    %96 = arith.select %93, %95, %91 : vector<8x128xi1>, vector<8x128xf32>
    %97 = arith.addf %0, %96 : vector<8x128xf32>
    %c9 = arith.constant 9 : index
    %c0_35 = arith.constant 0 : index
    %c0_36 = arith.constant 0 : index
    %98 = vector.load %arg1[%c9, %c0_35, %c0_36] : memref<36x8x128xf32, #tpu.memory_space<vmem>>, vector<1x8x128xf32>
    %99 = vector.shape_cast %98 : vector<1x8x128xf32> to vector<8x128xf32>
    %c10 = arith.constant 10 : index
    %c0_37 = arith.constant 0 : index
    %c0_38 = arith.constant 0 : index
    %100 = vector.load %arg1[%c10, %c0_37, %c0_38] : memref<36x8x128xf32, #tpu.memory_space<vmem>>, vector<1x8x128xf32>
    %101 = vector.shape_cast %100 : vector<1x8x128xf32> to vector<8x128xf32>
    %c11 = arith.constant 11 : index
    %c0_39 = arith.constant 0 : index
    %c0_40 = arith.constant 0 : index
    %102 = vector.load %arg1[%c11, %c0_39, %c0_40] : memref<36x8x128xf32, #tpu.memory_space<vmem>>, vector<1x8x128xf32>
    %103 = vector.shape_cast %102 : vector<1x8x128xf32> to vector<8x128xf32>
    %c3 = arith.constant 3 : index
    %c0_41 = arith.constant 0 : index
    %c0_42 = arith.constant 0 : index
    %104 = vector.load %arg1[%c3, %c0_41, %c0_42] : memref<36x8x128xf32, #tpu.memory_space<vmem>>, vector<1x8x128xf32>
    %105 = vector.shape_cast %104 : vector<1x8x128xf32> to vector<8x128xf32>
    %106 = arith.subf %105, %99 : vector<8x128xf32>
    %c4 = arith.constant 4 : index
    %c0_43 = arith.constant 0 : index
    %c0_44 = arith.constant 0 : index
    %107 = vector.load %arg1[%c4, %c0_43, %c0_44] : memref<36x8x128xf32, #tpu.memory_space<vmem>>, vector<1x8x128xf32>
    %108 = vector.shape_cast %107 : vector<1x8x128xf32> to vector<8x128xf32>
    %109 = arith.subf %108, %101 : vector<8x128xf32>
    %c5 = arith.constant 5 : index
    %c0_45 = arith.constant 0 : index
    %c0_46 = arith.constant 0 : index
    %110 = vector.load %arg1[%c5, %c0_45, %c0_46] : memref<36x8x128xf32, #tpu.memory_space<vmem>>, vector<1x8x128xf32>
    %111 = vector.shape_cast %110 : vector<1x8x128xf32> to vector<8x128xf32>
    %112 = arith.subf %111, %103 : vector<8x128xf32>
    %c15 = arith.constant 15 : index
    %c0_47 = arith.constant 0 : index
    %c0_48 = arith.constant 0 : index
    %113 = vector.load %arg1[%c15, %c0_47, %c0_48] : memref<36x8x128xf32, #tpu.memory_space<vmem>>, vector<1x8x128xf32>
    %114 = vector.shape_cast %113 : vector<1x8x128xf32> to vector<8x128xf32>
    %115 = arith.subf %114, %99 : vector<8x128xf32>
    %c16 = arith.constant 16 : index
    %c0_49 = arith.constant 0 : index
    %c0_50 = arith.constant 0 : index
    %116 = vector.load %arg1[%c16, %c0_49, %c0_50] : memref<36x8x128xf32, #tpu.memory_space<vmem>>, vector<1x8x128xf32>
    %117 = vector.shape_cast %116 : vector<1x8x128xf32> to vector<8x128xf32>
    %118 = arith.subf %117, %101 : vector<8x128xf32>
    %c17 = arith.constant 17 : index
    %c0_51 = arith.constant 0 : index
    %c0_52 = arith.constant 0 : index
    %119 = vector.load %arg1[%c17, %c0_51, %c0_52] : memref<36x8x128xf32, #tpu.memory_space<vmem>>, vector<1x8x128xf32>
    %120 = vector.shape_cast %119 : vector<1x8x128xf32> to vector<8x128xf32>
    %121 = arith.subf %120, %103 : vector<8x128xf32>
    %122 = arith.mulf %109, %121 : vector<8x128xf32>
    %123 = arith.mulf %112, %118 : vector<8x128xf32>
    %124 = arith.subf %122, %123 : vector<8x128xf32>
    %125 = arith.mulf %112, %115 : vector<8x128xf32>
    %126 = arith.mulf %106, %121 : vector<8x128xf32>
    %127 = arith.subf %125, %126 : vector<8x128xf32>
    %128 = arith.mulf %106, %118 : vector<8x128xf32>
    %129 = arith.mulf %109, %115 : vector<8x128xf32>
    %130 = arith.subf %128, %129 : vector<8x128xf32>
    %131 = arith.mulf %124, %124 : vector<8x128xf32>
    %132 = arith.mulf %127, %127 : vector<8x128xf32>
    %133 = arith.addf %131, %132 : vector<8x128xf32>
    %134 = arith.mulf %130, %130 : vector<8x128xf32>
    %135 = arith.addf %133, %134 : vector<8x128xf32>
    %136 = math.sqrt %135 : vector<8x128xf32>
    %137 = arith.mulf %106, %115 : vector<8x128xf32>
    %138 = arith.mulf %109, %118 : vector<8x128xf32>
    %139 = arith.addf %137, %138 : vector<8x128xf32>
    %140 = arith.mulf %112, %121 : vector<8x128xf32>
    %141 = arith.addf %139, %140 : vector<8x128xf32>
    %142 = math.absf %141 : vector<8x128xf32>
    %143 = arith.maximumf %136, %142 : vector<8x128xf32>
    %144 = arith.minimumf %136, %142 : vector<8x128xf32>
    %cst_53 = arith.constant 1.000000e-30 : f32
    %145 = vector.broadcast %cst_53 : f32 to vector<8x128xf32>
    %146 = arith.maximumf %143, %145 : vector<8x128xf32>
    %147 = arith.divf %144, %146 : vector<8x128xf32>
    %148 = arith.mulf %147, %147 : vector<8x128xf32>
    %cst_54 = arith.constant 0.00286622578 : f32
    %149 = vector.broadcast %cst_54 : f32 to vector<8x128xf32>
    %150 = arith.mulf %149, %148 : vector<8x128xf32>
    %cst_55 = arith.constant -0.0161657371 : f32
    %151 = vector.broadcast %cst_55 : f32 to vector<8x128xf32>
    %152 = arith.addf %150, %151 : vector<8x128xf32>
    %153 = arith.mulf %152, %148 : vector<8x128xf32>
    %cst_56 = arith.constant 0.0429096147 : f32
    %154 = vector.broadcast %cst_56 : f32 to vector<8x128xf32>
    %155 = arith.addf %153, %154 : vector<8x128xf32>
    %156 = arith.mulf %155, %148 : vector<8x128xf32>
    %cst_57 = arith.constant -0.0752896368 : f32
    %157 = vector.broadcast %cst_57 : f32 to vector<8x128xf32>
    %158 = arith.addf %156, %157 : vector<8x128xf32>
    %159 = arith.mulf %158, %148 : vector<8x128xf32>
    %cst_58 = arith.constant 0.106562637 : f32
    %160 = vector.broadcast %cst_58 : f32 to vector<8x128xf32>
    %161 = arith.addf %159, %160 : vector<8x128xf32>
    %162 = arith.mulf %161, %148 : vector<8x128xf32>
    %cst_59 = arith.constant -1.420890e-01 : f32
    %163 = vector.broadcast %cst_59 : f32 to vector<8x128xf32>
    %164 = arith.addf %162, %163 : vector<8x128xf32>
    %165 = arith.mulf %164, %148 : vector<8x128xf32>
    %cst_60 = arith.constant 0.199935511 : f32
    %166 = vector.broadcast %cst_60 : f32 to vector<8x128xf32>
    %167 = arith.addf %165, %166 : vector<8x128xf32>
    %168 = arith.mulf %167, %148 : vector<8x128xf32>
    %cst_61 = arith.constant -0.333331466 : f32
    %169 = vector.broadcast %cst_61 : f32 to vector<8x128xf32>
    %170 = arith.addf %168, %169 : vector<8x128xf32>
    %171 = arith.mulf %147, %148 : vector<8x128xf32>
    %172 = arith.mulf %171, %170 : vector<8x128xf32>
    %173 = arith.addf %147, %172 : vector<8x128xf32>
    %174 = arith.cmpf ogt, %136, %142 : vector<8x128xf32>
    %cst_62 = arith.constant 1.57079637 : f32
    %175 = vector.broadcast %cst_62 : f32 to vector<8x128xf32>
    %176 = arith.subf %175, %173 : vector<8x128xf32>
    %177 = arith.select %174, %176, %173 : vector<8x128xi1>, vector<8x128xf32>
    %cst_63 = arith.constant 0.000000e+00 : f32
    %178 = vector.broadcast %cst_63 : f32 to vector<8x128xf32>
    %179 = arith.cmpf olt, %141, %178 : vector<8x128xf32>
    %cst_64 = arith.constant 3.14159274 : f32
    %180 = vector.broadcast %cst_64 : f32 to vector<8x128xf32>
    %181 = arith.subf %180, %177 : vector<8x128xf32>
    %182 = arith.select %179, %181, %177 : vector<8x128xi1>, vector<8x128xf32>
    %cst_65 = arith.constant 3.000000e-01 : f32
    %183 = vector.broadcast %cst_65 : f32 to vector<8x128xf32>
    %184 = arith.cmpf olt, %182, %183 : vector<8x128xf32>
    %cst_66 = arith.constant 3.000000e-01 : f32
    %185 = vector.broadcast %cst_66 : f32 to vector<8x128xf32>
    %186 = arith.subf %185, %182 : vector<8x128xf32>
    %cst_67 = arith.constant 0.000000e+00 : f32
    %187 = vector.broadcast %cst_67 : f32 to vector<8x128xf32>
    %188 = arith.select %184, %186, %187 : vector<8x128xi1>, vector<8x128xf32>
    %cst_68 = arith.constant 2.900000e+00 : f32
    %189 = vector.broadcast %cst_68 : f32 to vector<8x128xf32>
    %190 = arith.cmpf ogt, %182, %189 : vector<8x128xf32>
    %cst_69 = arith.constant 2.900000e+00 : f32
    %191 = vector.broadcast %cst_69 : f32 to vector<8x128xf32>
    %192 = arith.subf %182, %191 : vector<8x128xf32>
    %193 = arith.select %190, %192, %188 : vector<8x128xi1>, vector<8x128xf32>
    %194 = arith.addf %97, %193 : vector<8x128xf32>
    %c24 = arith.constant 24 : index
    %c0_70 = arith.constant 0 : index
    %c0_71 = arith.constant 0 : index
    %195 = vector.load %arg1[%c24, %c0_70, %c0_71] : memref<36x8x128xf32, #tpu.memory_space<vmem>>, vector<1x8x128xf32>
    %196 = vector.shape_cast %195 : vector<1x8x128xf32> to vector<8x128xf32>
    %c25 = arith.constant 25 : index
    %c0_72 = arith.constant 0 : index
    %c0_73 = arith.constant 0 : index
    %197 = vector.load %arg1[%c25, %c0_72, %c0_73] : memref<36x8x128xf32, #tpu.memory_space<vmem>>, vector<1x8x128xf32>
    %198 = vector.shape_cast %197 : vector<1x8x128xf32> to vector<8x128xf32>
    %c26 = arith.constant 26 : index
    %c0_74 = arith.constant 0 : index
    %c0_75 = arith.constant 0 : index
    %199 = vector.load %arg1[%c26, %c0_74, %c0_75] : memref<36x8x128xf32, #tpu.memory_space<vmem>>, vector<1x8x128xf32>
    %200 = vector.shape_cast %199 : vector<1x8x128xf32> to vector<8x128xf32>
    %c18 = arith.constant 18 : index
    %c0_76 = arith.constant 0 : index
    %c0_77 = arith.constant 0 : index
    %201 = vector.load %arg1[%c18, %c0_76, %c0_77] : memref<36x8x128xf32, #tpu.memory_space<vmem>>, vector<1x8x128xf32>
    %202 = vector.shape_cast %201 : vector<1x8x128xf32> to vector<8x128xf32>
    %203 = arith.subf %202, %196 : vector<8x128xf32>
    %c19 = arith.constant 19 : index
    %c0_78 = arith.constant 0 : index
    %c0_79 = arith.constant 0 : index
    %204 = vector.load %arg1[%c19, %c0_78, %c0_79] : memref<36x8x128xf32, #tpu.memory_space<vmem>>, vector<1x8x128xf32>
    %205 = vector.shape_cast %204 : vector<1x8x128xf32> to vector<8x128xf32>
    %206 = arith.subf %205, %198 : vector<8x128xf32>
    %c20 = arith.constant 20 : index
    %c0_80 = arith.constant 0 : index
    %c0_81 = arith.constant 0 : index
    %207 = vector.load %arg1[%c20, %c0_80, %c0_81] : memref<36x8x128xf32, #tpu.memory_space<vmem>>, vector<1x8x128xf32>
    %208 = vector.shape_cast %207 : vector<1x8x128xf32> to vector<8x128xf32>
    %209 = arith.subf %208, %200 : vector<8x128xf32>
    %c30 = arith.constant 30 : index
    %c0_82 = arith.constant 0 : index
    %c0_83 = arith.constant 0 : index
    %210 = vector.load %arg1[%c30, %c0_82, %c0_83] : memref<36x8x128xf32, #tpu.memory_space<vmem>>, vector<1x8x128xf32>
    %211 = vector.shape_cast %210 : vector<1x8x128xf32> to vector<8x128xf32>
    %212 = arith.subf %211, %196 : vector<8x128xf32>
    %c31 = arith.constant 31 : index
    %c0_84 = arith.constant 0 : index
    %c0_85 = arith.constant 0 : index
    %213 = vector.load %arg1[%c31, %c0_84, %c0_85] : memref<36x8x128xf32, #tpu.memory_space<vmem>>, vector<1x8x128xf32>
    %214 = vector.shape_cast %213 : vector<1x8x128xf32> to vector<8x128xf32>
    %215 = arith.subf %214, %198 : vector<8x128xf32>
    %c32 = arith.constant 32 : index
    %c0_86 = arith.constant 0 : index
    %c0_87 = arith.constant 0 : index
    %216 = vector.load %arg1[%c32, %c0_86, %c0_87] : memref<36x8x128xf32, #tpu.memory_space<vmem>>, vector<1x8x128xf32>
    %217 = vector.shape_cast %216 : vector<1x8x128xf32> to vector<8x128xf32>
    %218 = arith.subf %217, %200 : vector<8x128xf32>
    %219 = arith.mulf %206, %218 : vector<8x128xf32>
    %220 = arith.mulf %209, %215 : vector<8x128xf32>
    %221 = arith.subf %219, %220 : vector<8x128xf32>
    %222 = arith.mulf %209, %212 : vector<8x128xf32>
    %223 = arith.mulf %203, %218 : vector<8x128xf32>
    %224 = arith.subf %222, %223 : vector<8x128xf32>
    %225 = arith.mulf %203, %215 : vector<8x128xf32>
    %226 = arith.mulf %206, %212 : vector<8x128xf32>
    %227 = arith.subf %225, %226 : vector<8x128xf32>
    %228 = arith.mulf %221, %221 : vector<8x128xf32>
    %229 = arith.mulf %224, %224 : vector<8x128xf32>
    %230 = arith.addf %228, %229 : vector<8x128xf32>
    %231 = arith.mulf %227, %227 : vector<8x128xf32>
    %232 = arith.addf %230, %231 : vector<8x128xf32>
    %233 = math.sqrt %232 : vector<8x128xf32>
    %234 = arith.mulf %203, %212 : vector<8x128xf32>
    %235 = arith.mulf %206, %215 : vector<8x128xf32>
    %236 = arith.addf %234, %235 : vector<8x128xf32>
    %237 = arith.mulf %209, %218 : vector<8x128xf32>
    %238 = arith.addf %236, %237 : vector<8x128xf32>
    %239 = math.absf %238 : vector<8x128xf32>
    %240 = arith.maximumf %233, %239 : vector<8x128xf32>
    %241 = arith.minimumf %233, %239 : vector<8x128xf32>
    %cst_88 = arith.constant 1.000000e-30 : f32
    %242 = vector.broadcast %cst_88 : f32 to vector<8x128xf32>
    %243 = arith.maximumf %240, %242 : vector<8x128xf32>
    %244 = arith.divf %241, %243 : vector<8x128xf32>
    %245 = arith.mulf %244, %244 : vector<8x128xf32>
    %cst_89 = arith.constant 0.00286622578 : f32
    %246 = vector.broadcast %cst_89 : f32 to vector<8x128xf32>
    %247 = arith.mulf %246, %245 : vector<8x128xf32>
    %cst_90 = arith.constant -0.0161657371 : f32
    %248 = vector.broadcast %cst_90 : f32 to vector<8x128xf32>
    %249 = arith.addf %247, %248 : vector<8x128xf32>
    %250 = arith.mulf %249, %245 : vector<8x128xf32>
    %cst_91 = arith.constant 0.0429096147 : f32
    %251 = vector.broadcast %cst_91 : f32 to vector<8x128xf32>
    %252 = arith.addf %250, %251 : vector<8x128xf32>
    %253 = arith.mulf %252, %245 : vector<8x128xf32>
    %cst_92 = arith.constant -0.0752896368 : f32
    %254 = vector.broadcast %cst_92 : f32 to vector<8x128xf32>
    %255 = arith.addf %253, %254 : vector<8x128xf32>
    %256 = arith.mulf %255, %245 : vector<8x128xf32>
    %cst_93 = arith.constant 0.106562637 : f32
    %257 = vector.broadcast %cst_93 : f32 to vector<8x128xf32>
    %258 = arith.addf %256, %257 : vector<8x128xf32>
    %259 = arith.mulf %258, %245 : vector<8x128xf32>
    %cst_94 = arith.constant -1.420890e-01 : f32
    %260 = vector.broadcast %cst_94 : f32 to vector<8x128xf32>
    %261 = arith.addf %259, %260 : vector<8x128xf32>
    %262 = arith.mulf %261, %245 : vector<8x128xf32>
    %cst_95 = arith.constant 0.199935511 : f32
    %263 = vector.broadcast %cst_95 : f32 to vector<8x128xf32>
    %264 = arith.addf %262, %263 : vector<8x128xf32>
    %265 = arith.mulf %264, %245 : vector<8x128xf32>
    %cst_96 = arith.constant -0.333331466 : f32
    %266 = vector.broadcast %cst_96 : f32 to vector<8x128xf32>
    %267 = arith.addf %265, %266 : vector<8x128xf32>
    %268 = arith.mulf %244, %245 : vector<8x128xf32>
    %269 = arith.mulf %268, %267 : vector<8x128xf32>
    %270 = arith.addf %244, %269 : vector<8x128xf32>
    %271 = arith.cmpf ogt, %233, %239 : vector<8x128xf32>
    %cst_97 = arith.constant 1.57079637 : f32
    %272 = vector.broadcast %cst_97 : f32 to vector<8x128xf32>
    %273 = arith.subf %272, %270 : vector<8x128xf32>
    %274 = arith.select %271, %273, %270 : vector<8x128xi1>, vector<8x128xf32>
    %cst_98 = arith.constant 0.000000e+00 : f32
    %275 = vector.broadcast %cst_98 : f32 to vector<8x128xf32>
    %276 = arith.cmpf olt, %238, %275 : vector<8x128xf32>
    %cst_99 = arith.constant 3.14159274 : f32
    %277 = vector.broadcast %cst_99 : f32 to vector<8x128xf32>
    %278 = arith.subf %277, %274 : vector<8x128xf32>
    %279 = arith.select %276, %278, %274 : vector<8x128xi1>, vector<8x128xf32>
    %cst_100 = arith.constant 3.000000e-01 : f32
    %280 = vector.broadcast %cst_100 : f32 to vector<8x128xf32>
    %281 = arith.cmpf olt, %279, %280 : vector<8x128xf32>
    %cst_101 = arith.constant 3.000000e-01 : f32
    %282 = vector.broadcast %cst_101 : f32 to vector<8x128xf32>
    %283 = arith.subf %282, %279 : vector<8x128xf32>
    %cst_102 = arith.constant 0.000000e+00 : f32
    %284 = vector.broadcast %cst_102 : f32 to vector<8x128xf32>
    %285 = arith.select %281, %283, %284 : vector<8x128xi1>, vector<8x128xf32>
    %cst_103 = arith.constant 2.900000e+00 : f32
    %286 = vector.broadcast %cst_103 : f32 to vector<8x128xf32>
    %287 = arith.cmpf ogt, %279, %286 : vector<8x128xf32>
    %cst_104 = arith.constant 2.900000e+00 : f32
    %288 = vector.broadcast %cst_104 : f32 to vector<8x128xf32>
    %289 = arith.subf %279, %288 : vector<8x128xf32>
    %290 = arith.select %287, %289, %285 : vector<8x128xi1>, vector<8x128xf32>
    %291 = arith.addf %194, %290 : vector<8x128xf32>
    %c27 = arith.constant 27 : index
    %c0_105 = arith.constant 0 : index
    %c0_106 = arith.constant 0 : index
    %292 = vector.load %arg1[%c27, %c0_105, %c0_106] : memref<36x8x128xf32, #tpu.memory_space<vmem>>, vector<1x8x128xf32>
    %293 = vector.shape_cast %292 : vector<1x8x128xf32> to vector<8x128xf32>
    %c28 = arith.constant 28 : index
    %c0_107 = arith.constant 0 : index
    %c0_108 = arith.constant 0 : index
    %294 = vector.load %arg1[%c28, %c0_107, %c0_108] : memref<36x8x128xf32, #tpu.memory_space<vmem>>, vector<1x8x128xf32>
    %295 = vector.shape_cast %294 : vector<1x8x128xf32> to vector<8x128xf32>
    %c29 = arith.constant 29 : index
    %c0_109 = arith.constant 0 : index
    %c0_110 = arith.constant 0 : index
    %296 = vector.load %arg1[%c29, %c0_109, %c0_110] : memref<36x8x128xf32, #tpu.memory_space<vmem>>, vector<1x8x128xf32>
    %297 = vector.shape_cast %296 : vector<1x8x128xf32> to vector<8x128xf32>
    %c21 = arith.constant 21 : index
    %c0_111 = arith.constant 0 : index
    %c0_112 = arith.constant 0 : index
    %298 = vector.load %arg1[%c21, %c0_111, %c0_112] : memref<36x8x128xf32, #tpu.memory_space<vmem>>, vector<1x8x128xf32>
    %299 = vector.shape_cast %298 : vector<1x8x128xf32> to vector<8x128xf32>
    %300 = arith.subf %299, %293 : vector<8x128xf32>
    %c22 = arith.constant 22 : index
    %c0_113 = arith.constant 0 : index
    %c0_114 = arith.constant 0 : index
    %301 = vector.load %arg1[%c22, %c0_113, %c0_114] : memref<36x8x128xf32, #tpu.memory_space<vmem>>, vector<1x8x128xf32>
    %302 = vector.shape_cast %301 : vector<1x8x128xf32> to vector<8x128xf32>
    %303 = arith.subf %302, %295 : vector<8x128xf32>
    %c23 = arith.constant 23 : index
    %c0_115 = arith.constant 0 : index
    %c0_116 = arith.constant 0 : index
    %304 = vector.load %arg1[%c23, %c0_115, %c0_116] : memref<36x8x128xf32, #tpu.memory_space<vmem>>, vector<1x8x128xf32>
    %305 = vector.shape_cast %304 : vector<1x8x128xf32> to vector<8x128xf32>
    %306 = arith.subf %305, %297 : vector<8x128xf32>
    %c33 = arith.constant 33 : index
    %c0_117 = arith.constant 0 : index
    %c0_118 = arith.constant 0 : index
    %307 = vector.load %arg1[%c33, %c0_117, %c0_118] : memref<36x8x128xf32, #tpu.memory_space<vmem>>, vector<1x8x128xf32>
    %308 = vector.shape_cast %307 : vector<1x8x128xf32> to vector<8x128xf32>
    %309 = arith.subf %308, %293 : vector<8x128xf32>
    %c34 = arith.constant 34 : index
    %c0_119 = arith.constant 0 : index
    %c0_120 = arith.constant 0 : index
    %310 = vector.load %arg1[%c34, %c0_119, %c0_120] : memref<36x8x128xf32, #tpu.memory_space<vmem>>, vector<1x8x128xf32>
    %311 = vector.shape_cast %310 : vector<1x8x128xf32> to vector<8x128xf32>
    %312 = arith.subf %311, %295 : vector<8x128xf32>
    %c35 = arith.constant 35 : index
    %c0_121 = arith.constant 0 : index
    %c0_122 = arith.constant 0 : index
    %313 = vector.load %arg1[%c35, %c0_121, %c0_122] : memref<36x8x128xf32, #tpu.memory_space<vmem>>, vector<1x8x128xf32>
    %314 = vector.shape_cast %313 : vector<1x8x128xf32> to vector<8x128xf32>
    %315 = arith.subf %314, %297 : vector<8x128xf32>
    %316 = arith.mulf %303, %315 : vector<8x128xf32>
    %317 = arith.mulf %306, %312 : vector<8x128xf32>
    %318 = arith.subf %316, %317 : vector<8x128xf32>
    %319 = arith.mulf %306, %309 : vector<8x128xf32>
    %320 = arith.mulf %300, %315 : vector<8x128xf32>
    %321 = arith.subf %319, %320 : vector<8x128xf32>
    %322 = arith.mulf %300, %312 : vector<8x128xf32>
    %323 = arith.mulf %303, %309 : vector<8x128xf32>
    %324 = arith.subf %322, %323 : vector<8x128xf32>
    %325 = arith.mulf %318, %318 : vector<8x128xf32>
    %326 = arith.mulf %321, %321 : vector<8x128xf32>
    %327 = arith.addf %325, %326 : vector<8x128xf32>
    %328 = arith.mulf %324, %324 : vector<8x128xf32>
    %329 = arith.addf %327, %328 : vector<8x128xf32>
    %330 = math.sqrt %329 : vector<8x128xf32>
    %331 = arith.mulf %300, %309 : vector<8x128xf32>
    %332 = arith.mulf %303, %312 : vector<8x128xf32>
    %333 = arith.addf %331, %332 : vector<8x128xf32>
    %334 = arith.mulf %306, %315 : vector<8x128xf32>
    %335 = arith.addf %333, %334 : vector<8x128xf32>
    %336 = math.absf %335 : vector<8x128xf32>
    %337 = arith.maximumf %330, %336 : vector<8x128xf32>
    %338 = arith.minimumf %330, %336 : vector<8x128xf32>
    %cst_123 = arith.constant 1.000000e-30 : f32
    %339 = vector.broadcast %cst_123 : f32 to vector<8x128xf32>
    %340 = arith.maximumf %337, %339 : vector<8x128xf32>
    %341 = arith.divf %338, %340 : vector<8x128xf32>
    %342 = arith.mulf %341, %341 : vector<8x128xf32>
    %cst_124 = arith.constant 0.00286622578 : f32
    %343 = vector.broadcast %cst_124 : f32 to vector<8x128xf32>
    %344 = arith.mulf %343, %342 : vector<8x128xf32>
    %cst_125 = arith.constant -0.0161657371 : f32
    %345 = vector.broadcast %cst_125 : f32 to vector<8x128xf32>
    %346 = arith.addf %344, %345 : vector<8x128xf32>
    %347 = arith.mulf %346, %342 : vector<8x128xf32>
    %cst_126 = arith.constant 0.0429096147 : f32
    %348 = vector.broadcast %cst_126 : f32 to vector<8x128xf32>
    %349 = arith.addf %347, %348 : vector<8x128xf32>
    %350 = arith.mulf %349, %342 : vector<8x128xf32>
    %cst_127 = arith.constant -0.0752896368 : f32
    %351 = vector.broadcast %cst_127 : f32 to vector<8x128xf32>
    %352 = arith.addf %350, %351 : vector<8x128xf32>
    %353 = arith.mulf %352, %342 : vector<8x128xf32>
    %cst_128 = arith.constant 0.106562637 : f32
    %354 = vector.broadcast %cst_128 : f32 to vector<8x128xf32>
    %355 = arith.addf %353, %354 : vector<8x128xf32>
    %356 = arith.mulf %355, %342 : vector<8x128xf32>
    %cst_129 = arith.constant -1.420890e-01 : f32
    %357 = vector.broadcast %cst_129 : f32 to vector<8x128xf32>
    %358 = arith.addf %356, %357 : vector<8x128xf32>
    %359 = arith.mulf %358, %342 : vector<8x128xf32>
    %cst_130 = arith.constant 0.199935511 : f32
    %360 = vector.broadcast %cst_130 : f32 to vector<8x128xf32>
    %361 = arith.addf %359, %360 : vector<8x128xf32>
    %362 = arith.mulf %361, %342 : vector<8x128xf32>
    %cst_131 = arith.constant -0.333331466 : f32
    %363 = vector.broadcast %cst_131 : f32 to vector<8x128xf32>
    %364 = arith.addf %362, %363 : vector<8x128xf32>
    %365 = arith.mulf %341, %342 : vector<8x128xf32>
    %366 = arith.mulf %365, %364 : vector<8x128xf32>
    %367 = arith.addf %341, %366 : vector<8x128xf32>
    %368 = arith.cmpf ogt, %330, %336 : vector<8x128xf32>
    %cst_132 = arith.constant 1.57079637 : f32
    %369 = vector.broadcast %cst_132 : f32 to vector<8x128xf32>
    %370 = arith.subf %369, %367 : vector<8x128xf32>
    %371 = arith.select %368, %370, %367 : vector<8x128xi1>, vector<8x128xf32>
    %cst_133 = arith.constant 0.000000e+00 : f32
    %372 = vector.broadcast %cst_133 : f32 to vector<8x128xf32>
    %373 = arith.cmpf olt, %335, %372 : vector<8x128xf32>
    %cst_134 = arith.constant 3.14159274 : f32
    %374 = vector.broadcast %cst_134 : f32 to vector<8x128xf32>
    %375 = arith.subf %374, %371 : vector<8x128xf32>
    %376 = arith.select %373, %375, %371 : vector<8x128xi1>, vector<8x128xf32>
    %cst_135 = arith.constant 3.000000e-01 : f32
    %377 = vector.broadcast %cst_135 : f32 to vector<8x128xf32>
    %378 = arith.cmpf olt, %376, %377 : vector<8x128xf32>
    %cst_136 = arith.constant 3.000000e-01 : f32
    %379 = vector.broadcast %cst_136 : f32 to vector<8x128xf32>
    %380 = arith.subf %379, %376 : vector<8x128xf32>
    %cst_137 = arith.constant 0.000000e+00 : f32
    %381 = vector.broadcast %cst_137 : f32 to vector<8x128xf32>
    %382 = arith.select %378, %380, %381 : vector<8x128xi1>, vector<8x128xf32>
    %cst_138 = arith.constant 2.900000e+00 : f32
    %383 = vector.broadcast %cst_138 : f32 to vector<8x128xf32>
    %384 = arith.cmpf ogt, %376, %383 : vector<8x128xf32>
    %cst_139 = arith.constant 2.900000e+00 : f32
    %385 = vector.broadcast %cst_139 : f32 to vector<8x128xf32>
    %386 = arith.subf %376, %385 : vector<8x128xf32>
    %387 = arith.select %384, %386, %382 : vector<8x128xi1>, vector<8x128xf32>
    %388 = arith.addf %291, %387 : vector<8x128xf32>
    %389 = arith.subf %2, %8 : vector<8x128xf32>
    %390 = arith.subf %4, %11 : vector<8x128xf32>
    %391 = arith.subf %6, %14 : vector<8x128xf32>
    %392 = arith.subf %202, %8 : vector<8x128xf32>
    %393 = arith.subf %205, %11 : vector<8x128xf32>
    %394 = arith.subf %208, %14 : vector<8x128xf32>
    %395 = arith.mulf %390, %394 : vector<8x128xf32>
    %396 = arith.mulf %391, %393 : vector<8x128xf32>
    %397 = arith.subf %395, %396 : vector<8x128xf32>
    %398 = arith.mulf %391, %392 : vector<8x128xf32>
    %399 = arith.mulf %389, %394 : vector<8x128xf32>
    %400 = arith.subf %398, %399 : vector<8x128xf32>
    %401 = arith.mulf %389, %393 : vector<8x128xf32>
    %402 = arith.mulf %390, %392 : vector<8x128xf32>
    %403 = arith.subf %401, %402 : vector<8x128xf32>
    %404 = arith.mulf %397, %397 : vector<8x128xf32>
    %405 = arith.mulf %400, %400 : vector<8x128xf32>
    %406 = arith.addf %404, %405 : vector<8x128xf32>
    %407 = arith.mulf %403, %403 : vector<8x128xf32>
    %408 = arith.addf %406, %407 : vector<8x128xf32>
    %409 = math.sqrt %408 : vector<8x128xf32>
    %410 = arith.mulf %389, %392 : vector<8x128xf32>
    %411 = arith.mulf %390, %393 : vector<8x128xf32>
    %412 = arith.addf %410, %411 : vector<8x128xf32>
    %413 = arith.mulf %391, %394 : vector<8x128xf32>
    %414 = arith.addf %412, %413 : vector<8x128xf32>
    %415 = math.absf %414 : vector<8x128xf32>
    %416 = arith.maximumf %409, %415 : vector<8x128xf32>
    %417 = arith.minimumf %409, %415 : vector<8x128xf32>
    %cst_140 = arith.constant 1.000000e-30 : f32
    %418 = vector.broadcast %cst_140 : f32 to vector<8x128xf32>
    %419 = arith.maximumf %416, %418 : vector<8x128xf32>
    %420 = arith.divf %417, %419 : vector<8x128xf32>
    %421 = arith.mulf %420, %420 : vector<8x128xf32>
    %cst_141 = arith.constant 0.00286622578 : f32
    %422 = vector.broadcast %cst_141 : f32 to vector<8x128xf32>
    %423 = arith.mulf %422, %421 : vector<8x128xf32>
    %cst_142 = arith.constant -0.0161657371 : f32
    %424 = vector.broadcast %cst_142 : f32 to vector<8x128xf32>
    %425 = arith.addf %423, %424 : vector<8x128xf32>
    %426 = arith.mulf %425, %421 : vector<8x128xf32>
    %cst_143 = arith.constant 0.0429096147 : f32
    %427 = vector.broadcast %cst_143 : f32 to vector<8x128xf32>
    %428 = arith.addf %426, %427 : vector<8x128xf32>
    %429 = arith.mulf %428, %421 : vector<8x128xf32>
    %cst_144 = arith.constant -0.0752896368 : f32
    %430 = vector.broadcast %cst_144 : f32 to vector<8x128xf32>
    %431 = arith.addf %429, %430 : vector<8x128xf32>
    %432 = arith.mulf %431, %421 : vector<8x128xf32>
    %cst_145 = arith.constant 0.106562637 : f32
    %433 = vector.broadcast %cst_145 : f32 to vector<8x128xf32>
    %434 = arith.addf %432, %433 : vector<8x128xf32>
    %435 = arith.mulf %434, %421 : vector<8x128xf32>
    %cst_146 = arith.constant -1.420890e-01 : f32
    %436 = vector.broadcast %cst_146 : f32 to vector<8x128xf32>
    %437 = arith.addf %435, %436 : vector<8x128xf32>
    %438 = arith.mulf %437, %421 : vector<8x128xf32>
    %cst_147 = arith.constant 0.199935511 : f32
    %439 = vector.broadcast %cst_147 : f32 to vector<8x128xf32>
    %440 = arith.addf %438, %439 : vector<8x128xf32>
    %441 = arith.mulf %440, %421 : vector<8x128xf32>
    %cst_148 = arith.constant -0.333331466 : f32
    %442 = vector.broadcast %cst_148 : f32 to vector<8x128xf32>
    %443 = arith.addf %441, %442 : vector<8x128xf32>
    %444 = arith.mulf %420, %421 : vector<8x128xf32>
    %445 = arith.mulf %444, %443 : vector<8x128xf32>
    %446 = arith.addf %420, %445 : vector<8x128xf32>
    %447 = arith.cmpf ogt, %409, %415 : vector<8x128xf32>
    %cst_149 = arith.constant 1.57079637 : f32
    %448 = vector.broadcast %cst_149 : f32 to vector<8x128xf32>
    %449 = arith.subf %448, %446 : vector<8x128xf32>
    %450 = arith.select %447, %449, %446 : vector<8x128xi1>, vector<8x128xf32>
    %cst_150 = arith.constant 0.000000e+00 : f32
    %451 = vector.broadcast %cst_150 : f32 to vector<8x128xf32>
    %452 = arith.cmpf olt, %414, %451 : vector<8x128xf32>
    %cst_151 = arith.constant 3.14159274 : f32
    %453 = vector.broadcast %cst_151 : f32 to vector<8x128xf32>
    %454 = arith.subf %453, %450 : vector<8x128xf32>
    %455 = arith.select %452, %454, %450 : vector<8x128xi1>, vector<8x128xf32>
    %cst_152 = arith.constant 2.000000e-01 : f32
    %456 = vector.broadcast %cst_152 : f32 to vector<8x128xf32>
    %457 = arith.cmpf olt, %455, %456 : vector<8x128xf32>
    %cst_153 = arith.constant 2.000000e-01 : f32
    %458 = vector.broadcast %cst_153 : f32 to vector<8x128xf32>
    %459 = arith.subf %458, %455 : vector<8x128xf32>
    %cst_154 = arith.constant 0.000000e+00 : f32
    %460 = vector.broadcast %cst_154 : f32 to vector<8x128xf32>
    %461 = arith.select %457, %459, %460 : vector<8x128xi1>, vector<8x128xf32>
    %cst_155 = arith.constant 3.000000e+00 : f32
    %462 = vector.broadcast %cst_155 : f32 to vector<8x128xf32>
    %463 = arith.cmpf ogt, %455, %462 : vector<8x128xf32>
    %cst_156 = arith.constant 3.000000e+00 : f32
    %464 = vector.broadcast %cst_156 : f32 to vector<8x128xf32>
    %465 = arith.subf %455, %464 : vector<8x128xf32>
    %466 = arith.select %463, %465, %461 : vector<8x128xi1>, vector<8x128xf32>
    %467 = arith.addf %388, %466 : vector<8x128xf32>
    %468 = arith.subf %99, %105 : vector<8x128xf32>
    %469 = arith.subf %101, %108 : vector<8x128xf32>
    %470 = arith.subf %103, %111 : vector<8x128xf32>
    %471 = arith.subf %299, %105 : vector<8x128xf32>
    %472 = arith.subf %302, %108 : vector<8x128xf32>
    %473 = arith.subf %305, %111 : vector<8x128xf32>
    %474 = arith.mulf %469, %473 : vector<8x128xf32>
    %475 = arith.mulf %470, %472 : vector<8x128xf32>
    %476 = arith.subf %474, %475 : vector<8x128xf32>
    %477 = arith.mulf %470, %471 : vector<8x128xf32>
    %478 = arith.mulf %468, %473 : vector<8x128xf32>
    %479 = arith.subf %477, %478 : vector<8x128xf32>
    %480 = arith.mulf %468, %472 : vector<8x128xf32>
    %481 = arith.mulf %469, %471 : vector<8x128xf32>
    %482 = arith.subf %480, %481 : vector<8x128xf32>
    %483 = arith.mulf %476, %476 : vector<8x128xf32>
    %484 = arith.mulf %479, %479 : vector<8x128xf32>
    %485 = arith.addf %483, %484 : vector<8x128xf32>
    %486 = arith.mulf %482, %482 : vector<8x128xf32>
    %487 = arith.addf %485, %486 : vector<8x128xf32>
    %488 = math.sqrt %487 : vector<8x128xf32>
    %489 = arith.mulf %468, %471 : vector<8x128xf32>
    %490 = arith.mulf %469, %472 : vector<8x128xf32>
    %491 = arith.addf %489, %490 : vector<8x128xf32>
    %492 = arith.mulf %470, %473 : vector<8x128xf32>
    %493 = arith.addf %491, %492 : vector<8x128xf32>
    %494 = math.absf %493 : vector<8x128xf32>
    %495 = arith.maximumf %488, %494 : vector<8x128xf32>
    %496 = arith.minimumf %488, %494 : vector<8x128xf32>
    %cst_157 = arith.constant 1.000000e-30 : f32
    %497 = vector.broadcast %cst_157 : f32 to vector<8x128xf32>
    %498 = arith.maximumf %495, %497 : vector<8x128xf32>
    %499 = arith.divf %496, %498 : vector<8x128xf32>
    %500 = arith.mulf %499, %499 : vector<8x128xf32>
    %cst_158 = arith.constant 0.00286622578 : f32
    %501 = vector.broadcast %cst_158 : f32 to vector<8x128xf32>
    %502 = arith.mulf %501, %500 : vector<8x128xf32>
    %cst_159 = arith.constant -0.0161657371 : f32
    %503 = vector.broadcast %cst_159 : f32 to vector<8x128xf32>
    %504 = arith.addf %502, %503 : vector<8x128xf32>
    %505 = arith.mulf %504, %500 : vector<8x128xf32>
    %cst_160 = arith.constant 0.0429096147 : f32
    %506 = vector.broadcast %cst_160 : f32 to vector<8x128xf32>
    %507 = arith.addf %505, %506 : vector<8x128xf32>
    %508 = arith.mulf %507, %500 : vector<8x128xf32>
    %cst_161 = arith.constant -0.0752896368 : f32
    %509 = vector.broadcast %cst_161 : f32 to vector<8x128xf32>
    %510 = arith.addf %508, %509 : vector<8x128xf32>
    %511 = arith.mulf %510, %500 : vector<8x128xf32>
    %cst_162 = arith.constant 0.106562637 : f32
    %512 = vector.broadcast %cst_162 : f32 to vector<8x128xf32>
    %513 = arith.addf %511, %512 : vector<8x128xf32>
    %514 = arith.mulf %513, %500 : vector<8x128xf32>
    %cst_163 = arith.constant -1.420890e-01 : f32
    %515 = vector.broadcast %cst_163 : f32 to vector<8x128xf32>
    %516 = arith.addf %514, %515 : vector<8x128xf32>
    %517 = arith.mulf %516, %500 : vector<8x128xf32>
    %cst_164 = arith.constant 0.199935511 : f32
    %518 = vector.broadcast %cst_164 : f32 to vector<8x128xf32>
    %519 = arith.addf %517, %518 : vector<8x128xf32>
    %520 = arith.mulf %519, %500 : vector<8x128xf32>
    %cst_165 = arith.constant -0.333331466 : f32
    %521 = vector.broadcast %cst_165 : f32 to vector<8x128xf32>
    %522 = arith.addf %520, %521 : vector<8x128xf32>
    %523 = arith.mulf %499, %500 : vector<8x128xf32>
    %524 = arith.mulf %523, %522 : vector<8x128xf32>
    %525 = arith.addf %499, %524 : vector<8x128xf32>
    %526 = arith.cmpf ogt, %488, %494 : vector<8x128xf32>
    %cst_166 = arith.constant 1.57079637 : f32
    %527 = vector.broadcast %cst_166 : f32 to vector<8x128xf32>
    %528 = arith.subf %527, %525 : vector<8x128xf32>
    %529 = arith.select %526, %528, %525 : vector<8x128xi1>, vector<8x128xf32>
    %cst_167 = arith.constant 0.000000e+00 : f32
    %530 = vector.broadcast %cst_167 : f32 to vector<8x128xf32>
    %531 = arith.cmpf olt, %493, %530 : vector<8x128xf32>
    %cst_168 = arith.constant 3.14159274 : f32
    %532 = vector.broadcast %cst_168 : f32 to vector<8x128xf32>
    %533 = arith.subf %532, %529 : vector<8x128xf32>
    %534 = arith.select %531, %533, %529 : vector<8x128xi1>, vector<8x128xf32>
    %cst_169 = arith.constant 2.000000e-01 : f32
    %535 = vector.broadcast %cst_169 : f32 to vector<8x128xf32>
    %536 = arith.cmpf olt, %534, %535 : vector<8x128xf32>
    %cst_170 = arith.constant 2.000000e-01 : f32
    %537 = vector.broadcast %cst_170 : f32 to vector<8x128xf32>
    %538 = arith.subf %537, %534 : vector<8x128xf32>
    %cst_171 = arith.constant 0.000000e+00 : f32
    %539 = vector.broadcast %cst_171 : f32 to vector<8x128xf32>
    %540 = arith.select %536, %538, %539 : vector<8x128xi1>, vector<8x128xf32>
    %cst_172 = arith.constant 3.000000e+00 : f32
    %541 = vector.broadcast %cst_172 : f32 to vector<8x128xf32>
    %542 = arith.cmpf ogt, %534, %541 : vector<8x128xf32>
    %cst_173 = arith.constant 3.000000e+00 : f32
    %543 = vector.broadcast %cst_173 : f32 to vector<8x128xf32>
    %544 = arith.subf %534, %543 : vector<8x128xf32>
    %545 = arith.select %542, %544, %540 : vector<8x128xi1>, vector<8x128xf32>
    %546 = arith.addf %467, %545 : vector<8x128xf32>
    %c0_i32 = arith.constant 0 : i32
    %547 = arith.cmpi eq, %arg0, %c0_i32 : i32
    %548 = arith.extui %547 : i1 to i32
    %c0_i32_174 = arith.constant 0 : i32
    %549 = arith.cmpi ne, %548, %c0_i32_174 : i32
    scf.if %549 {
      %553 = tpu.iota {dimensions = array<i32: 0>} : vector<8x128xi32>
      %554 = tpu.iota {dimensions = array<i32: 1>} : vector<8x128xi32>
      %c8_i32 = arith.constant 8 : i32
      %555 = arith.muli %arg0, %c8_i32 : i32
      %556 = vector.broadcast %555 : i32 to vector<8x128xi32>
      %557 = arith.addi %556, %553 : vector<8x128xi32>
      %c128_i32 = arith.constant 128 : i32
      %558 = vector.broadcast %c128_i32 : i32 to vector<8x128xi32>
      %559 = arith.muli %557, %558 : vector<8x128xi32>
      %560 = arith.addi %559, %554 : vector<8x128xi32>
      %c16_i32 = arith.constant 16 : i32
      %561 = vector.broadcast %c16_i32 : i32 to vector<8x128xi32>
      %562 = arith.cmpi slt, %560, %561 : vector<8x128xi32>
      %cst_177 = arith.constant 0.000000e+00 : f32
      %563 = vector.broadcast %cst_177 : f32 to vector<8x128xf32>
      %564 = arith.select %562, %546, %563 : vector<8x128xi1>, vector<8x128xf32>
      %c0_178 = arith.constant 0 : index
      %c0_179 = arith.constant 0 : index
      %c0_180 = arith.constant 0 : index
      %565 = vector.load %arg2[%c0_178, %c0_179, %c0_180] : memref<1x8x128xf32, #tpu.memory_space<vmem>>, vector<1x8x128xf32>
      %566 = vector.shape_cast %565 : vector<1x8x128xf32> to vector<8x128xf32>
      %567 = vector.shape_cast %564 : vector<8x128xf32> to vector<1x8x128xf32>
      tpu.vector_store %arg2[%c0_178, %c0_179, %c0_180], %567 {strides = array<i32>} : memref<1x8x128xf32, #tpu.memory_space<vmem>>, vector<1x8x128xf32>,
    } else {
    }
    %c0_i32_175 = arith.constant 0 : i32
    %550 = arith.cmpi ne, %arg0, %c0_i32_175 : i32
    %551 = arith.extui %550 : i1 to i32
    %c0_i32_176 = arith.constant 0 : i32
    %552 = arith.cmpi ne, %551, %c0_i32_176 : i32
    scf.if %552 {
      %c0_177 = arith.constant 0 : index
      %c0_178 = arith.constant 0 : index
      %c0_179 = arith.constant 0 : index
      %553 = vector.load %arg2[%c0_177, %c0_178, %c0_179] : memref<1x8x128xf32, #tpu.memory_space<vmem>>, vector<1x8x128xf32>
      %554 = vector.shape_cast %553 : vector<1x8x128xf32> to vector<8x128xf32>
      %555 = vector.shape_cast %546 : vector<8x128xf32> to vector<1x8x128xf32>
      tpu.vector_store %arg2[%c0_177, %c0_178, %c0_179], %555 {strides = array<i32>} : memref<1x8x128xf32, #tpu.memory_space<vmem>>, vector<1x8x128xf32>,
    } else {
    }
    return
  }
  func.func @transform_0(%arg0: i32) -> (i32, i32, i32) {
    %c0_i32 = arith.constant 0 : i32
    %c0_i32_0 = arith.constant 0 : i32
    %c0_i32_1 = arith.constant 0 : i32
    return %c0_i32, %arg0, %c0_i32_0 : i32, i32, i32
  }
  func.func @transform_1(%arg0: i32) -> (i32, i32, i32) {
    %c0_i32 = arith.constant 0 : i32
    %c0_i32_0 = arith.constant 0 : i32
    %c0_i32_1 = arith.constant 0 : i32
    return %arg0, %c0_i32, %c0_i32_0 : i32, i32, i32
  }
}

</mosaic_0001>

<bundles_post_ra>
// kernel: _angle_loss_sum.1
= control target key start
LH: loop header
LB: loop body
LE: loop exit
PB: predicated region body
PF: predicated region fallthrough
CT: control target
= control target key end

     0   :  { %s1102_s0 = inlined_call_operand.vmem [shape: f32[36,8,128], index: 0, kind: input, shape index: {}]   ;;  %s1103_s1 = inlined_call_operand.vmem [shape: f32[1,8,128], index: 1, kind: output, shape index: {}]  }
   0x1   :  { %v596_v0 = vld [vmem:[%s1102_s0 + $0x30] sm:$0xff]  ;;  %v601_v1 = vld [vmem:[%s1102_s0 + $0x38] sm:$0xff]  ;;  %v606_v2 = vld [vmem:[%s1102_s0 + $0x40] sm:$0xff] }
   0x2   :  { %v611_v3 = vld [vmem:[%s1102_s0] sm:$0xff]  ;;  %v616_v4 = vld [vmem:[%s1102_s0 + $0x8] sm:$0xff]  ;;  %v621_v5 = vld [vmem:[%s1102_s0 + $0x10] sm:$0xff] }
   0x3   :  { %v15_v6 = vsub.f32 %v611_v3, %v596_v0  ;;  %v18_v7 = vsub.f32 %v616_v4, %v601_v1  ;;  %v629_v8 = vsub.f32 %v621_v5, %v606_v2  ;;  %v523_v9 = vld [vmem:[%s1102_s0 + $0x60] sm:$0xff]  ;;  %v524_v10 = vld [vmem:[%s1102_s0 + $0x68] sm:$0xff]  ;;  %v525_v11 = vld [vmem:[%s1102_s0 + $0x70] sm:$0xff] }
   0x4   :  { %v24_v12 = vsub.f32 %v523_v9, %v596_v0  ;;  %v27_v13 = vsub.f32 %v524_v10, %v601_v1  ;;  %v643_v14 = vsub.f32 %v525_v11, %v606_v2  ;;  %v648_v15 = vld [vmem:[%s1102_s0 + $0x48] sm:$0xff]  ;;  %v653_v16 = vld [vmem:[%s1102_s0 + $0x50] sm:$0xff]  ;;  %v658_v17 = vld [vmem:[%s1102_s0 + $0x58] sm:$0xff] }
   0x5   :  { %v667_v22 = vld [vmem:[%s1102_s0 + $0x18] sm:$0xff]  ;;  %v672_v23 = vld [vmem:[%s1102_s0 + $0x20] sm:$0xff]  ;;  %v677_v24 = vld [vmem:[%s1102_s0 + $0x28] sm:$0xff] }
   0x6   :  { %v31_v18 = vmul.f32 %v643_v14, %v18_v7  ;;  %v32_v19 = vmul.f32 %v27_v13, %v629_v8  ;;  %v34_v20 = vmul.f32 %v24_v12, %v629_v8  ;;  %v35_v21 = vmul.f32 %v643_v14, %v15_v6  ;;  %v533_v27 = vld [vmem:[%s1102_s0 + $0x78] sm:$0xff]  ;;  %v534_v28 = vld [vmem:[%s1102_s0 + $0x80] sm:$0xff]  ;;  %v535_v31 = vld [vmem:[%s1102_s0 + $0x88] sm:$0xff] }
   0x7   :  { %v37_v25 = vmul.f32 %v27_v13, %v15_v6  ;;  %v38_v26 = vmul.f32 %v24_v12, %v18_v7  ;;  %v102_v33 = vsub.f32 %v667_v22, %v648_v15  ;;  %v105_v34 = vsub.f32 %v672_v23, %v653_v16  ;;  %v537_v45 = vld [vmem:[%s1102_s0 + $0xc0] sm:$0xff]  ;;  %v538_v49 = vld [vmem:[%s1102_s0 + $0xc8] sm:$0xff]  ;;  %v706_v50 = vld [vmem:[%s1102_s0 + $0x90] sm:$0xff] }
   0x8   :  { %v33_v29 = vsub.f32 %v31_v18, %v32_v19  ;;  %v36_v30 = vsub.f32 %v34_v20, %v35_v21  ;;  %v108_v35 = vsub.f32 %v677_v24, %v658_v17  ;;  %v111_v38 = vsub.f32 %v533_v27, %v648_v15  ;;  %v711_v51 = vld [vmem:[%s1102_s0 + $0x98] sm:$0xff]  ;;  %v539_v54 = vld [vmem:[%s1102_s0 + $0xd0] sm:$0xff]  ;;  %v721_v55 = vld [vmem:[%s1102_s0 + $0xa0] sm:$0xff] }
   0x9   :  { %v39_v32 = vsub.f32 %v37_v25, %v38_v26  ;;  %v114_v39 = vsub.f32 %v534_v28, %v653_v16  ;;  %v117_v41 = vsub.f32 %v535_v31, %v658_v17  ;;  %v543_v58 = vld [vmem:[%s1102_s0 + $0xf0] sm:$0xff]  ;;  %v544_v59 = vld [vmem:[%s1102_s0 + $0xf8] sm:$0xff]  ;;  %v545_v60 = vld [vmem:[%s1102_s0 + $0x100] sm:$0xff]  ;;  %v52_v61 = vmul.f32 %v24_v12, %v15_v6 }
   0xa   :  { %v40_v36 = vmul.f32 %v33_v29, %v33_v29  ;;  %v41_v37 = vmul.f32 %v36_v30, %v36_v30  ;;  %v121_v44 = vmul.f32 %v111_v38, %v108_v35  ;;  %v125_v53 = vmul.f32 %v111_v38, %v105_v34  ;;  %v547_v30 = vld [vmem:[%s1102_s0 + $0xd8] sm:$0xff] }
   0xb   :  { %v43_v40 = vmul.f32 %v39_v32, %v39_v32  ;;  %v119_v43 = vmul.f32 %v114_v39, %v108_v35  ;;  %v118_v46 = vmul.f32 %v117_v41, %v105_v34  ;;  %v122_v47 = vmul.f32 %v117_v41, %v102_v33 }
   0xc   :  { %v42_v42 = vadd.f32 %v41_v37, %v40_v36  ;;  %v124_v48 = vmul.f32 %v114_v39, %v102_v33  ;;  %v734_v62 = vsub.f32 %v706_v50, %v537_v45  ;;  %v737_v63 = vsub.f32 %v711_v51, %v538_v49  ;;  %v549_v36 = vld [vmem:[%s1102_s0 + $0xe8] sm:$0xff] }
   0xd   :  { %v120_v56 = vsub.f32 %v118_v46, %v119_v43  ;;  %v123_v57 = vsub.f32 %v121_v44, %v122_v47  ;;  %v53_v9 = vmul.f32 %v27_v13, %v18_v7  ;;  %v740_v19 = vsub.f32 %v721_v55, %v539_v54  ;;  %v767_v37 = vld [vmem:[%s1102_s0 + $0xa8] sm:$0xff]  ;;  %v554_v46 = vld [vmem:[%s1102_s0 + $0x110] sm:$0xff] }
   0xe   :  { %v713_v52 = vadd.f32 %v43_v40, %v42_v42  ;;  %v126_v10 = vsub.f32 %v124_v48, %v125_v53  ;;  %v198_v20 = vsub.f32 %v543_v58, %v537_v45  ;;  %v201_v21 = vsub.f32 %v544_v59, %v538_v49  ;;  %v773_v40 = vld [vmem:[%s1102_s0 + $0xb0] sm:$0xff]  ;;  %v778_v42 = vld [vmem:[%s1102_s0 + $0xb8] sm:$0xff]  ;;  %v553_v43 = vld [vmem:[%s1102_s0 + $0x108] sm:$0xff] }
   0xf   :  { %v127_v11 = vmul.f32 %v120_v56, %v120_v56  ;;  %v128_v18 = vmul.f32 %v123_v57, %v123_v57  ;;  %v742_v25 = vsub.f32 %v545_v60, %v539_v54  ;;  %v139_v6 = vmul.f32 %v111_v38, %v102_v33  ;;  %v555_v53 = vld [vmem:[%s1102_s0 + $0x118] sm:$0xff] }
  0x10   :  { %559 = vrsqrt.f32 %v713_v52  ;;  %v130_v27 = vmul.f32 %v126_v10, %v126_v10  ;;  %v140_v12 = vmul.f32 %v114_v39, %v105_v34  ;;  %v206_v29 = vmul.f32 %v201_v21, %v740_v19  ;;  %v548_v34 = vld [vmem:[%s1102_s0 + $0xe0] sm:$0xff] }
  0x11   :  { %v129_v26 = vadd.f32 %v128_v18, %v127_v11  ;;  %v205_v28 = vmul.f32 %v742_v25, %v737_v63  ;;  %v208_v7 = vmul.f32 %v198_v20, %v740_v19  ;;  %v209_v13 = vmul.f32 %v742_v25, %v734_v62 }
  0x12   :  { %v55_v31 = vmul.f32 %v643_v14, %v629_v8  ;;  %v211_v33 = vmul.f32 %v201_v21, %v734_v62  ;;  %v54_v38 = vadd.f32 %v53_v9, %v52_v61  ;;  %v212_v14 = vmul.f32 %v198_v20, %v737_v63 }
  0x13   :  { %v755_v32 = vadd.f32 %v130_v27, %v129_v26  ;;  %v207_v39 = vsub.f32 %v205_v28, %v206_v29  ;;  %v210_v8 = vsub.f32 %v208_v7, %v209_v13  ;;  %v141_v44 = vadd.f32 %v140_v12, %v139_v6 }
  0x14   :  { %v142_v45 = vmul.f32 %v117_v41, %v108_v35  ;;  %v213_v47 = vsub.f32 %v211_v33, %v212_v14  ;;  %v792_v54 = vsub.f32 %v596_v0, %v611_v3  ;;  %v795_v56 = vsub.f32 %v767_v37, %v547_v30 }
  0x15   :  { %561 = vrsqrt.f32 %v755_v32  ;;  %v214_v48 = vmul.f32 %v207_v39, %v207_v39  ;;  %v215_v49 = vmul.f32 %v210_v8, %v210_v8  ;;  %v798_v35 = vsub.f32 %v773_v40, %v548_v34 }
  0x16   :  { %v801_v41 = vsub.f32 %v778_v42, %v549_v36  ;;  %v285_v57 = vsub.f32 %v553_v43, %v547_v30  ;;  %v803_v58 = vadd.f32 %v55_v31, %v54_v38  ;;  %v217_v60 = vmul.f32 %v213_v47, %v213_v47 }
  0x17   :  { %v216_v59 = vadd.f32 %v215_v49, %v214_v48  ;;  %v288_v61 = vsub.f32 %v554_v46, %v548_v34  ;;  %v805_v9 = vadd.f32 %v142_v45, %v141_v44  ;;  %v291_v10 = vsub.f32 %v555_v53, %v549_v36 }
  0x18   :  { %v295_v0 = vmul.f32 %v285_v57, %v801_v41  ;;  %v810_v11 = vsub.f32 %v601_v1, %v616_v4  ;;  %v299_v6 = vmul.f32 %v285_v57, %v798_v35  ;;  %vm47_vm0 = vcmp.eq.f32.partialorder %v713_v52, inf }
  0x19   :  { %v812_v18 = vadd.f32 %v217_v60, %v216_v59  ;;  %v293_v26 = vmul.f32 %v288_v61, %v801_v41  ;;  %v298_v27 = vmul.f32 %v288_v61, %v795_v56  ;;  %v50_v28 = vand.u32 2147483648, %v713_v52 }
  0x1a   :  { %v292_v29 = vmul.f32 %v291_v10, %v798_v35  ;;  %v296_v7 = vmul.f32 %v291_v10, %v795_v56  ;;  %vm49_vm1 = vcmp.eq.f32.partialorder %v713_v52, 0.0  ;;  %v824_v13 = vand.u32 2147483647, %v803_v58 }
  0x1b   :  { %563 = vrsqrt.f32 %v812_v18  ;;  %v226_v30 = vmul.f32 %v198_v20, %v734_v62  ;;  %v227_v31 = vmul.f32 %v201_v21, %v737_v63  ;;  %v831_v34 = vsub.f32 %v606_v2, %v621_v5 }
  0x1c   :  { %v294_v33 = vsub.f32 %v292_v29, %v293_v26  ;;  %v835_v38 = vand.u32 2147483647, %v805_v9  ;;  %v297_v39 = vsub.f32 %v295_v0, %v296_v7  ;;  %v300_v8 = vsub.f32 %v298_v27, %v299_v6 }
  0x1d   :  { %v560_v12 = vpop.eup %559  ;;  %v841_v62 = vsub.f32 %v706_v50, %v611_v3  ;;  %v845_v63 = vsub.f32 %v711_v51, %v616_v4  ;;  %vm134_vm2 = vcmp.eq.f32.partialorder %v755_v32, inf  ;;  %v228_v21 = vadd.f32 %v227_v31, %v226_v30 }
  0x1e   :  { %v46_v1 = vmul.f32 %v560_v12, %v713_v52  ;;  %v301_v43 = vmul.f32 %v294_v33, %v294_v33  ;;  %v302_v20 = vmul.f32 %v297_v39, %v297_v39  ;;  %v304_v44 = vmul.f32 %v300_v8, %v300_v8 }
  0x1f   :  { %v854_v45 = vsub.f32 %v721_v55, %v621_v5  ;;  %v362_v3 = vmul.f32 %v845_v63, %v831_v34  ;;  %vm136_vm3 = vcmp.eq.f32.partialorder %v755_v32, 0.0  ;;  %v137_v51 = vand.u32 2147483648, %v755_v32 }
  0x20   :  { %v48_v36 = vsel %vm47_vm0, %v713_v52, %v46_v1  ;;  %v229_v52 = vmul.f32 %v742_v25, %v740_v19  ;;  %v303_v46 = vadd.f32 %v302_v20, %v301_v43  ;;  %v364_v25 = vmul.f32 %v841_v62, %v831_v34 }
  0x21   :  { %v837_v14 = vsel %vm49_vm1, %v50_v28, %v48_v36  ;;  %v361_v19 = vmul.f32 %v854_v45, %v810_v11  ;;  %v367_v5 = vmul.f32 %v845_v63, %v792_v54  ;;  %v365_v48 = vmul.f32 %v854_v45, %v792_v54 }
  0x22   :  { %v58_v2 = vmax.f32 %v837_v14, %v824_v13  ;;  %v562_v4 = vpop.eup %561  ;;  %v867_v55 = vadd.f32 %v304_v44, %v303_v46  ;;  %v368_v49 = vmul.f32 %v841_v62, %v810_v11  ;;  %v876_v59 = vadd.f32 %v229_v52, %v228_v21 }
  0x23   :  { %v133_v47 = vmul.f32 %v562_v4, %v755_v32  ;;  %v363_v60 = vsub.f32 %v361_v19, %v362_v3  ;;  %v313_v26 = vmul.f32 %v285_v57, %v795_v56  ;;  %vm221_vm4 = vcmp.eq.f32.partialorder %v812_v18, inf }
  0x24   :  { %v60_v50 = vmax.f32 %v58_v2, 1e-30  ;;  %v314_v6 = vmul.f32 %v288_v61, %v798_v35  ;;  %v316_v12 = vmul.f32 %v291_v10, %v801_v41  ;;  %vm223_vm5 = vcmp.eq.f32.partialorder %v812_v18, 0.0 }
  0x25   :  { %v135_v53 = vsel %vm134_vm2, %v755_v32, %v133_v47  ;;  %v366_v32 = vsub.f32 %v364_v25, %v365_v48  ;;  %v369_v28 = vsub.f32 %v367_v5, %v368_v49  ;;  %v370_v29 = vmul.f32 %v363_v60, %v363_v60 }
  0x26   :  { %565 = vrcp.f32 %v60_v50  ;;  %v878_v0 = vsel %vm136_vm3, %v137_v51, %v135_v53  ;;  %v224_v30 = vand.u32 2147483648, %v812_v18  ;;  %v890_v56 = vand.u32 2147483647, %v876_v59 }
  0x27   :  { %567 = vrsqrt.f32 %v867_v55  ;;  %v145_v27 = vmax.f32 %v878_v0, %v835_v38  ;;  %v424_v57 = vsub.f32 %v648_v15, %v667_v22  ;;  %v371_v35 = vmul.f32 %v366_v32, %v366_v32 }
  0x28   :  { %v564_v7 = vpop.eup %563  ;;  %v373_v61 = vmul.f32 %v369_v28, %v369_v28  ;;  %v897_v41 = vsub.f32 %v658_v17, %v677_v24  ;;  %v425_v10 = vsub.f32 %v653_v16, %v672_v23  ;;  %v427_v33 = vsub.f32 %v767_v37, %v667_v22 }
  0x29   :  { %v147_v1 = vmax.f32 %v145_v27, 1e-30  ;;  %v220_v31 = vmul.f32 %v564_v7, %v812_v18  ;;  %v428_v36 = vsub.f32 %v773_v40, %v672_v23  ;;  %v315_v39 = vadd.f32 %v314_v6, %v313_v26 }
  0x2a   :  { %v372_v8 = vadd.f32 %v371_v35, %v370_v29  ;;  %v910_v17 = vsub.f32 %v778_v42, %v677_v24  ;;  %v59_v22 = vmin.f32 %v837_v14, %v824_v13  ;;  %v433_v2 = vmul.f32 %v427_v33, %v897_v41 }
  0x2b   :  { %569 = vrcp.f32 %v147_v1  ;;  %v222_v15 = vsel %vm221_vm4, %v812_v18, %v220_v31  ;;  %v431_v16 = vmul.f32 %v428_v36, %v897_v41  ;;  %v436_v42 = vmul.f32 %v428_v36, %v424_v57 }
  0x2c   :  { %v914_v43 = vsel %vm223_vm5, %v224_v30, %v222_v15  ;;  %v921_v37 = vadd.f32 %v373_v61, %v372_v8  ;;  %v430_v40 = vmul.f32 %v910_v17, %v425_v10  ;;  %v434_v24 = vmul.f32 %v910_v17, %v424_v57 }
  0x2d   :  { %v232_v23 = vmax.f32 %v914_v43, %v890_v56  ;;  %v926_v52 = vadd.f32 %v316_v12, %v315_v39  ;;  %v382_v21 = vmul.f32 %v841_v62, %v792_v54  ;;  %v437_v4 = vmul.f32 %v427_v33, %v425_v10 }
  0x2e   :  { %571 = vrsqrt.f32 %v921_v37  ;;  %v432_v44 = vsub.f32 %v430_v40, %v431_v16  ;;  %v435_v3 = vsub.f32 %v433_v2, %v434_v24  ;;  %vm308_vm6 = vcmp.eq.f32.partialorder %v867_v55, inf }
  0x2f   :  { %v234_v18 = vmax.f32 %v232_v23, 1e-30  ;;  %v383_v51 = vmul.f32 %v845_v63, %v810_v11  ;;  %v311_v47 = vand.u32 2147483648, %v867_v55  ;;  %v438_v19 = vsub.f32 %v436_v42, %v437_v4 }
  0x30   :  { %v439_v25 = vmul.f32 %v432_v44, %v432_v44  ;;  %v440_v5 = vmul.f32 %v435_v3, %v435_v3  ;;  %vm310_vm7 = vcmp.eq.f32.partialorder %v867_v55, 0.0  ;;  %v944_v48 = vand.u32 2147483647, %v926_v52 }
  0x31   :  { %573 = vrcp.f32 %v234_v18  ;;  %v146_v11 = vmin.f32 %v878_v0, %v835_v38  ;;  %v442_v49 = vmul.f32 %v438_v19, %v438_v19  ;;  %v384_v26 = vadd.f32 %v383_v51, %v382_v21 }
  0x32   :  { %v441_v63 = vadd.f32 %v440_v5, %v439_v25  ;;  %v385_v27 = vmul.f32 %v854_v45, %v831_v34  ;;  %v451_v34 = vmul.f32 %v427_v33, %v424_v57  ;;  %v452_v45 = vmul.f32 %v428_v36, %v425_v10 }
  0x33   :  { %v566_v20 = vpop.eup %565  ;;  %v233_v61 = vmin.f32 %v914_v43, %v890_v56  ;;  %vm377_vm8 = vcmp.eq.f32.partialorder %v921_v37, inf  ;;  %v380_v8 = vand.u32 2147483648, %v921_v37  ;;  %vm379_vm9 = vcmp.eq.f32.partialorder %v921_v37, 0.0 }
  0x34   :  { %v931_v50 = vmul.f32 %v566_v20, %v59_v22  ;;  %v568_v46 = vpop.eup %567  ;;  %v443_v12 = vadd.f32 %v442_v49, %v441_v63  ;;  %v959_v31 = vadd.f32 %v385_v27, %v384_v26  ;;  %v453_v36 = vadd.f32 %v452_v45, %v451_v34 }
  0x35   :  { %v307_v62 = vmul.f32 %v568_v46, %v867_v55  ;;  %v454_v23 = vmul.f32 %v910_v17, %v897_v41  ;;  %vm81_vm12 = vcmp.gt.f32.partialorder %v837_v14, %v824_v13  ;;  %vm168_vm13 = vcmp.gt.f32.partialorder %v878_v0, %v835_v38 }
  0x36   :  { %v939_v54 = vmul.f32 %v931_v50, %v931_v50  ;;  %575 = vrsqrt.f32 %v443_v12  ;;  %v974_v57 = vand.u32 2147483647, %v959_v31  ;;  %vm446_vm10 = vcmp.eq.f32.partialorder %v443_v12, inf }
  0x37   :  { %v309_v60 = vsel %vm308_vm6, %v867_v55, %v307_v62  ;;  %v991_v41 = vadd.f32 %v454_v23, %v453_v36  ;;  %v449_v5 = vand.u32 2147483648, %v443_v12  ;;  %vm448_vm11 = vcmp.eq.f32.partialorder %v443_v12, 0.0 }
  0x38   :  { %v64_v53 = vmul.f32 0.0028662258, %v939_v54  ;;  %v952_v6 = vsel %vm310_vm7, %v311_v47, %v309_v60  ;;  %v570_v32 = vpop.eup %569  ;;  %vm255_vm14 = vcmp.gt.f32.partialorder %v914_v43, %v890_v56  ;;  %vm84_vm15 = vcmp.lt.f32.partialorder %v803_v58, 0.0 }
  0x39   :  { %v319_v29 = vmax.f32 %v952_v6, %v944_v48  ;;  %v956_v7 = vmul.f32 %v570_v32, %v146_v11  ;;  %v320_v46 = vmin.f32 %v952_v6, %v944_v48  ;;  %v999_v63 = vand.u32 2147483647, %v991_v41 }
  0x3a   :  { %v65_v28 = vadd.f32 -0.016165737, %v64_v53  ;;  %vm171_vm0 = vcmp.lt.f32.partialorder %v805_v9, 0.0  ;;  %vm342_vm1 = vcmp.gt.f32.partialorder %v952_v6, %v944_v48  ;;  %vm258_vm2 = vcmp.lt.f32.partialorder %v876_v59, 0.0 }
  0x3b   :  { %v321_v30 = vmax.f32 %v319_v29, 1e-30  ;;  %v963_v55 = vmul.f32 %v956_v7, %v956_v7  ;;  %v572_v15 = vpop.eup %571  ;;  %vm345_vm5 = vcmp.lt.f32.partialorder %v926_v52, 0.0 }
  0x3c   :  { %v66_v1 = vmul.f32 %v65_v28, %v939_v54  ;;  %v376_v22 = vmul.f32 %v572_v15, %v921_v37 }
  0x3d   :  { %577 = vrcp.f32 %v321_v30  ;;  %v151_v39 = vmul.f32 0.0028662258, %v963_v55 }
  0x3e   :  { %v67_v35 = vadd.f32 0.042909615, %v66_v1  ;;  %v574_v10 = vpop.eup %573  ;;  %v378_v24 = vsel %vm377_vm8, %v921_v37, %v376_v22 }
  0x3f   :  { %v152_v33 = vadd.f32 -0.016165737, %v151_v39  ;;  %v978_v2 = vmul.f32 %v574_v10, %v233_v61  ;;  %v982_v18 = vsel %vm379_vm9, %v380_v8, %v378_v24 }
  0x40   :  { %v68_v16 = vmul.f32 %v67_v35, %v939_v54  ;;  %v388_v44 = vmax.f32 %v982_v18, %v974_v57  ;;  %v389_v10 = vmin.f32 %v982_v18, %v974_v57  ;;  %vm411_vm9 = vcmp.gt.f32.partialorder %v982_v18, %v974_v57 }
  0x41   :  { %v153_v42 = vmul.f32 %v152_v33, %v963_v55  ;;  %v987_v21 = vmul.f32 %v978_v2, %v978_v2 }
  0x42   :  { %v69_v40 = vadd.f32 -0.07528964, %v68_v16  ;;  %v390_v37 = vmax.f32 %v388_v44, 1e-30 }
  0x43   :  { %v154_v3 = vadd.f32 0.042909615, %v153_v42  ;;  %v238_v4 = vmul.f32 0.0028662258, %v987_v21  ;;  %v576_v47 = vpop.eup %575 }
  0x44   :  { %v70_v20 = vmul.f32 %v69_v40, %v939_v54  ;;  %579 = vrcp.f32 %v390_v37  ;;  %v445_v11 = vmul.f32 %v576_v47, %v443_v12 }
  0x45   :  { %v155_v51 = vmul.f32 %v154_v3, %v963_v55  ;;  %v239_v25 = vadd.f32 -0.016165737, %v238_v4 }
  0x46   :  { %v71_v17 = vadd.f32 0.10656264, %v70_v20  ;;  %v447_v27 = vsel %vm446_vm10, %v443_v12, %v445_v11  ;;  %v165_v11 = vmul.f32 %v963_v55, %v956_v7  ;;  %vm414_vm10 = vcmp.lt.f32.partialorder %v959_v31, 0.0 }
  0x47   :  { %v156_v62 = vadd.f32 -0.07528964, %v155_v51  ;;  %v240_v49 = vmul.f32 %v239_v25, %v987_v21  ;;  %v1005_v29 = vsel %vm448_vm11, %v449_v5, %v447_v27 }
  0x48   :  { %v72_v19 = vmul.f32 %v71_v17, %v939_v54  ;;  %v457_v30 = vmax.f32 %v1005_v29, %v999_v63 }
  0x49   :  { %v157_v26 = vmul.f32 %v156_v62, %v963_v55  ;;  %v241_v32 = vadd.f32 0.042909615, %v240_v49  ;;  %v78_v62 = vmul.f32 %v939_v54, %v931_v50  ;;  %v458_v49 = vmin.f32 %v1005_v29, %v999_v63 }
  0x4a   :  { %v578_v53 = vpop.eup %577  ;;  %v73_v60 = vadd.f32 -0.142089, %v72_v19  ;;  %v459_v12 = vmax.f32 %v457_v30, 1e-30 }
  0x4b   :  { %v1003_v28 = vmul.f32 %v578_v53, %v320_v46  ;;  %v158_v1 = vadd.f32 0.10656264, %v157_v26  ;;  %v242_v34 = vmul.f32 %v241_v32, %v987_v21 }
  0x4c   :  { %v74_v35 = vmul.f32 %v73_v60, %v939_v54  ;;  %581 = vrcp.f32 %v459_v12 }
  0x4d   :  { %v1012_v45 = vmul.f32 %v1003_v28, %v1003_v28  ;;  %v159_v61 = vmul.f32 %v158_v1, %v963_v55  ;;  %v243_v15 = vadd.f32 -0.07528964, %v242_v34 }
  0x4e   :  { %v75_v33 = vadd.f32 0.19993551, %v74_v35 }
  0x4f   :  { %v325_v39 = vmul.f32 0.0028662258, %v1012_v45  ;;  %v160_v8 = vadd.f32 -0.142089, %v159_v61  ;;  %v244_v16 = vmul.f32 %v243_v15, %v987_v21 }
  0x50   :  { %v76_v17 = vmul.f32 %v75_v33, %v939_v54 }
  0x51   :  { %v326_v22 = vadd.f32 -0.016165737, %v325_v39  ;;  %v161_v36 = vmul.f32 %v160_v8, %v963_v55  ;;  %v245_v23 = vadd.f32 0.10656264, %v244_v16  ;;  %v580_v24 = vpop.eup %579 }
  0x52   :  { %v1023_v3 = vmul.f32 %v580_v24, %v389_v10  ;;  %v77_v5 = vadd.f32 -0.33333147, %v76_v17 }
  0x53   :  { %v327_v40 = vmul.f32 %v326_v22, %v1012_v45  ;;  %v162_v42 = vadd.f32 0.19993551, %v161_v36  ;;  %v246_v20 = vmul.f32 %v245_v23, %v987_v21 }
  0x54   :  { %v1030_v46 = vmul.f32 %v1023_v3, %v1023_v3  ;;  %v79_v30 = vmul.f32 %v78_v62, %v77_v5 }
  0x55   :  { %v328_v44 = vadd.f32 0.042909615, %v327_v40  ;;  %v163_v4 = vmul.f32 %v162_v42, %v963_v55  ;;  %v247_v37 = vadd.f32 -0.142089, %v246_v20  ;;  %v252_v55 = vmul.f32 %v987_v21, %v978_v2 }
  0x56   :  { %v394_v25 = vmul.f32 0.0028662258, %v1030_v46  ;;  %v80_v16 = vadd.f32 %v79_v30, %v931_v50  ;;  %v408_v9 = vmul.f32 %v1030_v46, %v1023_v3 }
  0x57   :  { %v329_v51 = vmul.f32 %v328_v44, %v1012_v45  ;;  %v248_v47 = vmul.f32 %v247_v37, %v987_v21  ;;  %v164_v53 = vadd.f32 -0.33333147, %v163_v4  ;;  %v339_v4 = vmul.f32 %v1012_v45, %v1003_v28 }
  0x58   :  { %v395_v27 = vadd.f32 -0.016165737, %v394_v25  ;;  %v82_v24 = vsub.f32 1.5707964, %v80_v16 }
  0x59   :  { %v330_v19 = vadd.f32 -0.07528964, %v329_v51  ;;  %v249_v60 = vadd.f32 0.19993551, %v248_v47  ;;  %v582_v32 = vpop.eup %581  ;;  %v166_v61 = vmul.f32 %v165_v11, %v164_v53 }
  0x5a   :  { %v396_v35 = vmul.f32 %v395_v27, %v1030_v46  ;;  %v1045_v12 = vmul.f32 %v582_v32, %v458_v49  ;;  %v83_v47 = vsel %vm81_vm12, %v82_v24, %v80_v16 }
  0x5b   :  { %v331_v26 = vmul.f32 %v330_v19, %v1012_v45  ;;  %v250_v1 = vmul.f32 %v249_v60, %v987_v21  ;;  %v167_v33 = vadd.f32 %v166_v61, %v956_v7  ;;  %v85_v0 = vsub.f32 3.1415927, %v83_v47 }
  0x5c   :  { %v397_v39 = vadd.f32 0.042909615, %v396_v35  ;;  %v1050_v8 = vmul.f32 %v1045_v12, %v1045_v12 }
  0x5d   :  { %v332_v34 = vadd.f32 0.10656264, %v331_v26  ;;  %v251_v54 = vadd.f32 -0.33333147, %v250_v1  ;;  %v169_v44 = vsub.f32 1.5707964, %v167_v33  ;;  %v86_v26 = vsel %vm84_vm15, %v85_v0, %v83_v47 }
  0x5e   :  { %v398_v10 = vmul.f32 %v397_v39, %v1030_v46  ;;  %v463_v23 = vmul.f32 0.0028662258, %v1050_v8  ;;  %vm87_vm3 = vcmp.lt.f32.partialorder %v86_v26, 0.3  ;;  %vm90_vm6 = vcmp.gt.f32.partialorder %v86_v26, 2.9 }
  0x5f   :  { %v333_v15 = vmul.f32 %v332_v34, %v1012_v45  ;;  %v253_v36 = vmul.f32 %v252_v55, %v251_v54  ;;  %v170_v13 = vsel %vm168_vm13, %v169_v44, %v167_v33  ;;  %v88_v34 = vsub.f32 0.3, %v86_v26 }
  0x60   :  { %v399_v40 = vadd.f32 -0.07528964, %v398_v10  ;;  %v464_v20 = vadd.f32 -0.016165737, %v463_v23  ;;  %v526_v55 = vadd.f32 -2.9, %v86_v26 }
  0x61   :  { %v334_v22 = vadd.f32 -0.142089, %v333_v15  ;;  %v254_v50 = vadd.f32 %v253_v36, %v978_v2  ;;  %v89_v39 = vsel %vm87_vm3, %v88_v34, 0.0 }
  0x62   :  { %v400_v17 = vmul.f32 %v399_v40, %v1030_v46  ;;  %v465_v37 = vmul.f32 %v464_v20, %v1050_v8 }
  0x63   :  { %v335_v21 = vmul.f32 %v334_v22, %v1012_v45  ;;  %v256_v14 = vsub.f32 1.5707964, %v254_v50 }
  0x64   :  { %v401_v51 = vadd.f32 0.10656264, %v400_v17  ;;  %v466_v25 = vadd.f32 0.042909615, %v465_v37  ;;  %v477_v17 = vmul.f32 %v1050_v8, %v1045_v12 }
  0x65   :  { %v336_v42 = vadd.f32 0.19993551, %v335_v21  ;;  %v257_v53 = vsel %vm255_vm14, %v256_v14, %v254_v50  ;;  %v92_v21 = vsel %vm90_vm6, %v526_v55, %v89_v39 }
  0x66   :  { %v402_v2 = vmul.f32 %v401_v51, %v1030_v46  ;;  %v467_v38 = vmul.f32 %v466_v25, %v1050_v8  ;;  %v259_v1 = vsub.f32 3.1415927, %v257_v53 }
  0x67   :  { %v337_v7 = vmul.f32 %v336_v42, %v1012_v45  ;;  %v172_v45 = vsub.f32 3.1415927, %v170_v13 }
  0x68   :  { %v403_v62 = vadd.f32 -0.142089, %v402_v2  ;;  %v468_v49 = vadd.f32 -0.07528964, %v467_v38  ;;  %v260_v61 = vsel %vm258_vm2, %v259_v1, %v257_v53 }
  0x69   :  { %v338_v19 = vadd.f32 -0.33333147, %v337_v7  ;;  %v173_v32 = vsel %vm171_vm0, %v172_v45, %v170_v13  ;;  %vm261_vm8 = vcmp.lt.f32.partialorder %v260_v61, 0.3  ;;  %vm264_vm11 = vcmp.gt.f32.partialorder %v260_v61, 2.9 }
  0x6a   :  { %v404_v60 = vmul.f32 %v403_v62, %v1030_v46  ;;  %v469_v43 = vmul.f32 %v468_v49, %v1050_v8  ;;  %v175_v48 = vsub.f32 0.3, %v173_v32  ;;  %vm174_vm4 = vcmp.lt.f32.partialorder %v173_v32, 0.3 }
  0x6b   :  { %v340_v5 = vmul.f32 %v339_v4, %v338_v19  ;;  %vm177_vm7 = vcmp.gt.f32.partialorder %v173_v32, 2.9  ;;  %v536_v16 = vadd.f32 -2.9, %v173_v32  ;;  %v546_v24 = vadd.f32 -2.9, %v260_v61 }
  0x6c   :  { %v405_v27 = vadd.f32 0.19993551, %v404_v60  ;;  %v470_v58 = vadd.f32 0.10656264, %v469_v43  ;;  %v176_v22 = vsel %vm174_vm4, %v175_v48, 0.0  ;;  %v497_v7 = vlaneseq }
  0x6d   :  { %v341_v11 = vadd.f32 %v340_v5, %v1003_v28  ;;  %v179_v40 = vsel %vm177_vm7, %v536_v16, %v176_v22  ;;  %vm480_vm0 = vcmp.gt.f32.partialorder %v1005_v29, %v999_v63 }
  0x6e   :  { %v406_v30 = vmul.f32 %v405_v27, %v1030_v46  ;;  %v471_v35 = vmul.f32 %v470_v58, %v1050_v8  ;;  %v262_v46 = vsub.f32 0.3, %v260_v61  ;;  %v180_v57 = vadd.f32 %v179_v40, %v92_v21 }
  0x6f   :  { %v343_v56 = vsub.f32 1.5707964, %v341_v11  ;;  %v498_v14 = vshrl.u32 %v497_v7, 7  ;;  %v500_v31 = vand.u32 127, %v497_v7 }
  0x70   :  { %v407_v6 = vadd.f32 -0.33333147, %v406_v30  ;;  %v472_v15 = vadd.f32 -0.142089, %v471_v35  ;;  %v263_v42 = vsel %vm261_vm8, %v262_v46, 0.0 }
  0x71   :  { %v344_v28 = vsel %vm342_vm1, %v343_v56, %v341_v11  ;;  %v266_v4 = vsel %vm264_vm11, %v546_v24, %v263_v42  ;;  %v504_v45 = vmul.u32 128, %v498_v14  ;;  %vm483_vm1 = vcmp.lt.f32.partialorder %v991_v41, 0.0 }
  0x72   :  { %v346_v54 = vsub.f32 3.1415927, %v344_v28  ;;  %v409_v59 = vmul.f32 %v408_v9, %v407_v6  ;;  %v473_v33 = vmul.f32 %v472_v15, %v1050_v8  ;;  %v267_v13 = vadd.f32 %v266_v4, %v180_v57 }
  0x73   :  { %v505_v43 = vadd.s32 %v504_v45, %v500_v31 }
  0x74   :  { %v410_v10 = vadd.f32 %v409_v59, %v1023_v3  ;;  %v347_v36 = vsel %vm345_vm5, %v346_v54, %v344_v28  ;;  %v474_v23 = vadd.f32 0.19993551, %v473_v33 }
  0x75   :  { %v349_v20 = vsub.f32 0.3, %v347_v36  ;;  %vm348_vm12 = vcmp.lt.f32.partialorder %v347_v36, 0.3  ;;  %v556_v37 = vadd.f32 -2.9, %v347_v36 }
  0x76   :  { %v412_v52 = vsub.f32 1.5707964, %v410_v10  ;;  %v475_v3 = vmul.f32 %v474_v23, %v1050_v8  ;;  %vm351_vm13 = vcmp.gt.f32.partialorder %v347_v36, 2.9  ;;  %vm506_vm4 = vcmp.lt.s32.totalorder %v505_v43, 16 }
  0x77   :  { %v350_v47 = vsel %vm348_vm12, %v349_v20, 0.0 }
  0x78   :  { %v413_v44 = vsel %vm411_vm9, %v412_v52, %v410_v10  ;;  %v476_v18 = vadd.f32 -0.33333147, %v475_v3  ;;  %v353_v2 = vsel %vm351_vm13, %v556_v37, %v350_v47 }
  0x79   :  { %v415_v50 = vsub.f32 3.1415927, %v413_v44  ;;  %v354_v62 = vadd.f32 %v353_v2, %v267_v13 }
  0x7a   :  { %v478_v25 = vmul.f32 %v477_v17, %v476_v18 }
  0x7b   :  { %v416_v51 = vsel %vm414_vm10, %v415_v50, %v413_v44 }
  0x7c   :  { %v418_v19 = vsub.f32 0.2, %v416_v51  ;;  %vm417_vm14 = vcmp.lt.f32.partialorder %v416_v51, 0.2  ;;  %v557_v5 = vadd.f32 -3.0, %v416_v51  ;;  %v479_v38 = vadd.f32 %v478_v25, %v1045_v12 }
  0x7d   :  { %vm420_vm15 = vcmp.gt.f32.partialorder %v416_v51, 3.0 }
  0x7e   :  { %v419_v8 = vsel %vm417_vm14, %v418_v19, 0.0  ;;  %v481_v0 = vsub.f32 1.5707964, %v479_v38 }
  0x7f   :  { %v422_v11 = vsel %vm420_vm15, %v557_v5, %v419_v8 }
  0x80   :  { %v482_v49 = vsel %vm480_vm0, %v481_v0, %v479_v38  ;;  %v423_v60 = vadd.f32 %v422_v11, %v354_v62 }
  0x81   :  { %v484_v53 = vsub.f32 3.1415927, %v482_v49 }
  0x83   :  { %v485_v56 = vsel %vm483_vm1, %v484_v53, %v482_v49 }
  0x84   :  { %vm486_vm2 = vcmp.lt.f32.partialorder %v485_v56, 0.2  ;;  %v487_v26 = vsub.f32 0.2, %v485_v56  ;;  %vm489_vm3 = vcmp.gt.f32.partialorder %v485_v56, 3.0  ;;  %v558_v12 = vadd.f32 -3.0, %v485_v56 }
  0x86   :  { %v488_v27 = vsel %vm486_vm2, %v487_v26, 0.0 }
  0x87   :  { %v491_v32 = vsel %vm489_vm3, %v558_v12, %v488_v27 }
  0x88   :  { %v492_v63 = vadd.f32 %v491_v32, %v423_v60 }
  0x8a   :  { %v507_v29 = vsel %vm506_vm4, %v492_v63, 0.0 }
  0x8b   :  { %508 = vst [vmem:[%s1103_s1] sm:$0xff] %v507_v29 }

</bundles_post_ra>
